<compile_context>
chip_gen: v7x
topology: tpu7x:2x2x1
jax: 0.10.0
libtpu: 0.0.40
codegen_flags: <defaults>
</compile_context>

<pallas_src>
import numpy as np

import jax
import jax.numpy as jnp
from jax import lax
from jax.experimental import pallas as pl
from jax.experimental.pallas import tpu as pltpu


# --------------------------------------------------------------------------
# Fused Pallas kernel: four chained same-padded 3x3 convs on one batch element
# --------------------------------------------------------------------------
def _conv3x3(pad_ref, x, w_ref, b_ref, Hr, Wr):
    """One same-padded 3x3 conv stage, entirely in VMEM / vregs.

    pad_ref : (Hr+2, Wr+2, Cin) VMEM scratch used as a zero-halo buffer
    x       : (Hr*Wr, Cin) f32 value (this stage's input)
    w_ref   : (3, 3, Cin, Cout) Ref (HWIO), b_ref: (1, Cout) Ref
    returns : (Hr*Wr, Cout) f32
    """
    KH, KW, Cin, Cout = w_ref.shape
    pad_ref[...] = jnp.zeros_like(pad_ref)                      # zero halo
    pad_ref[1:Hr + 1, 1:Wr + 1, :] = x.reshape(Hr, Wr, Cin)     # interior
    acc = jnp.zeros((Hr * Wr, Cout), jnp.float32)
    for kh in range(KH):                                        # static 3x3 taps
        for kw in range(KW):
            patch = pad_ref[kh:kh + Hr, kw:kw + Wr, :].reshape(Hr * Wr, Cin)
            acc = acc + jnp.dot(patch, w_ref[kh, kw],
                                preferred_element_type=jnp.float32)
    return acc + b_ref[...]                                     # (HW,Cout)+(1,Cout)


def _pack_unpack_kernel(x_ref, w1, b1, w2, b2, w3, b3, w4, b4, o_ref,
                        p1, p2, p3, p4):
    # x_ref: (1, Hr*Wr, C0)   o_ref: (1, Hr*Wr, Cout_final)
    Hr = p1.shape[0] - 2
    Wr = p1.shape[1] - 2
    y = x_ref[0].astype(jnp.float32)        # (HW, 12)
    y = _conv3x3(p1, y, w1, b1, Hr, Wr)     # pack   Conv3d-as-Conv2d : 12 -> 24
    y = _conv3x3(p2, y, w2, b2, Hr, Wr)     # pack   Conv2d           : 24 -> 4
    y = _conv3x3(p3, y, w3, b3, Hr, Wr)     # unpack Conv2d           :  4 -> 6
    y = _conv3x3(p4, y, w4, b4, Hr, Wr)     # unpack Conv3d-as-Conv2d :  6 -> 12
    o_ref[0] = y.astype(o_ref.dtype)        # single store per batch element


def fused_pack_unpack_convs(x, kparams, Hr, Wr):
    """x: (N, Hr*Wr, C0).  kparams: (w1,b1,...,w4,b4) with w in HWIO, b (1,Cout)."""
    N, HW, C0 = x.shape
    w1, b1, w2, b2, w3, b3, w4, b4 = kparams
    Cout = w4.shape[-1]

    def const_spec(a):                       # weights/biases: constant block
        nd = a.ndim
        return pl.BlockSpec(a.shape, lambda n, _nd=nd: (0,) * _nd)

    return pl.pallas_call(
        _pack_unpack_kernel,
        out_shape=jax.ShapeDtypeStruct((N, HW, Cout), x.dtype),
        grid=(N,),
        in_specs=[
            pl.BlockSpec((1, HW, C0), lambda n: (n, 0, 0)),
            const_spec(w1), const_spec(b1),
            const_spec(w2), const_spec(b2),
            const_spec(w3), const_spec(b3),
            const_spec(w4), const_spec(b4),
        ],
        out_specs=pl.BlockSpec((1, HW, Cout), lambda n: (n, 0, 0)),
        scratch_shapes=[
            pltpu.VMEM((Hr + 2, Wr + 2, w1.shape[2]), jnp.float32),
            pltpu.VMEM((Hr + 2, Wr + 2, w2.shape[2]), jnp.float32),
            pltpu.VMEM((Hr + 2, Wr + 2, w3.shape[2]), jnp.float32),
            pltpu.VMEM((Hr + 2, Wr + 2, w4.shape[2]), jnp.float32),
        ],
        compiler_params=pltpu.CompilerParams(
            dimension_semantics=("parallel",),
            vmem_limit_bytes=32 * 1024 * 1024),
    )(x, w1, b1, w2, b2, w3, b3, w4, b4)


# --------------------------------------------------------------------------
# One-time (outside jit) parameter preparation
# --------------------------------------------------------------------------
def _expand_conv3d_np(w3, b3, depth):
    """Fold Conv3d(1, Co3, 3, padding=1) applied over `depth` slices into an
    equivalent Conv2d weight (Co3*depth, depth, 3, 3) + bias.  Output channel
    o = co3*depth + d matches PyTorch's .view(N, -1, H, W)."""
    w3 = np.asarray(w3)
    b3 = np.asarray(b3)
    Co3, _, KD, KH, KW = w3.shape
    w2 = np.zeros((Co3, depth, depth, KH, KW), w3.dtype)
    for d in range(depth):
        for kd in range(KD):
            ci = d + kd - 1                 # zero padding along depth
            if 0 <= ci < depth:
                w2[:, d, ci] = w3[:, 0, kd]
    return w2.reshape(Co3 * depth, depth, KH, KW), np.repeat(b3, depth)


def _oihw_to_hwio(w):
    return np.transpose(np.asarray(w), (2, 3, 1, 0))


def prepare_kernel_params(params, R=2, C=3):
    """Precompute (once, outside jit) the four stage weights in (3,3,Cin,Cout)
    layout and biases as (1,Cout)."""
    depth_pack = C * R * R                                       # 12
    w1, b1 = _expand_conv3d_np(params["pack_w3"], params["pack_b3"], depth_pack)
    w2, b2 = np.asarray(params["pack_w2"]), np.asarray(params["pack_b2"])
    w3, b3 = np.asarray(params["unpack_w2"]), np.asarray(params["unpack_b2"])
    depth_unpack = w3.shape[0]                                   # R*R*3 // D = 6
    w4, b4 = _expand_conv3d_np(params["unpack_w3"], params["unpack_b3"],
                               depth_unpack)

    out = []
    for w, b in ((w1, b1), (w2, b2), (w3, b3), (w4, b4)):
        out.append(jnp.asarray(_oihw_to_hwio(w), jnp.float32))
        out.append(jnp.asarray(np.asarray(b).reshape(1, -1), jnp.float32))
    return tuple(out)


# --------------------------------------------------------------------------
# Parameters (deterministic, PyTorch-style uniform fan-in init)
# --------------------------------------------------------------------------
def init_params(key, R=2, D=2, K=3, Co=4, C=3):
    ks = jax.random.split(key, 8)

    def u(k, shape, fan_in):
        bound = 1.0 / float(fan_in) ** 0.5
        return jax.random.uniform(k, shape, jnp.float32, -bound, bound)

    p = {}
    p["pack_w3"] = u(ks[0], (D, 1, K, K, K), K * K * K)            # Conv3d(1,D,3)
    p["pack_b3"] = u(ks[1], (D,), K * K * K)
    cin2 = R * R * 3 * D                                           # 24
    p["pack_w2"] = u(ks[2], (Co, cin2, K, K), cin2 * K * K)        # Conv2d(24,4,3)
    p["pack_b2"] = u(ks[3], (Co,), cin2 * K * K)
    cout_u = R * R * 3 // D                                        # 6
    p["unpack_w2"] = u(ks[4], (cout_u, Co, K, K), Co * K * K)      # Conv2d(4,6,3)
    p["unpack_b2"] = u(ks[5], (cout_u,), Co * K * K)
    p["unpack_w3"] = u(ks[6], (D, 1, K, K, K), K * K * K)          # Conv3d(1,D,3)
    p["unpack_b3"] = u(ks[7], (D,), K * K * K)
    return p


# --------------------------------------------------------------------------
# PackUnpack forward (Pallas path)
# --------------------------------------------------------------------------
def pack_unpack_forward(x_nchw, kparams, R=2):
    N, C, H, W = x_nchw.shape
    Hr, Wr = H // R, W // R

    # NCHW -> (SpaceToDepth, NHWC) fused into a single transpose.
    # Channel order matches PyTorch SpaceToDepth: ch = bi*R*C + bj*C + c.
    x = x_nchw.reshape(N, C, Hr, R, Wr, R)
    x = jnp.transpose(x, (0, 2, 4, 3, 5, 1))          # (N, Hr, Wr, bi, bj, C)
    x = x.reshape(N, Hr * Wr, R * R * C)              # (N, HW, 12)

    # All four convs in one Pallas kernel (intermediates stay in VMEM).
    y = fused_pack_unpack_convs(x, kparams, Hr, Wr)   # (N, HW, R*R*3)

    # (DepthToSpace, NHWC) -> NCHW fused into a single transpose.
    Cn = y.shape[-1] // (R * R)
    y = y.reshape(N, Hr, Wr, R, R, Cn)                # channels split as (bi, bj, c)
    y = jnp.transpose(y, (0, 5, 1, 3, 2, 4))          # (N, Cn, Hr, bi, Wr, bj)
    return y.reshape(N, Cn, Hr * R, Wr * R)


# --------------------------------------------------------------------------
# Pure-JAX reference (mirrors the PyTorch module exactly, NCHW)
# --------------------------------------------------------------------------
def _conv2d_ref(x, w, b):
    y = lax.conv_general_dilated(x, w, (1, 1), ((1, 1), (1, 1)),
                                 dimension_numbers=("NCHW", "OIHW", "NCHW"),
                                 precision=lax.Precision.HIGHEST)
    return y + b[None, :, None, None]


def _conv3d_ref(x, w, b):
    y = lax.conv_general_dilated(x, w, (1, 1, 1), ((1, 1), (1, 1), (1, 1)),
                                 dimension_numbers=("NCDHW", "OIDHW", "NCDHW"),
                                 precision=lax.Precision.HIGHEST)
    return y + b[None, :, None, None, None]


def pack_unpack_ref(x, params, R=2):
    N, C, H, W = x.shape
    # SpaceToDepth
    y = x.reshape(N, C, H // R, R, W // R, R)
    y = jnp.transpose(y, (0, 3, 5, 1, 2, 4)).reshape(N, C * R * R, H // R, W // R)
    # Pack
    y = _conv3d_ref(y[:, None], params["pack_w3"], params["pack_b3"])
    y = y.reshape(N, -1, H // R, W // R)
    y = _conv2d_ref(y, params["pack_w2"], params["pack_b2"])
    # Unpack
    y = _conv2d_ref(y, params["unpack_w2"], params["unpack_b2"])
    y = _conv3d_ref(y[:, None], params["unpack_w3"], params["unpack_b3"])
    y = y.reshape(N, -1, H // R, W // R)
    # DepthToSpace
    Cc = y.shape[1]
    y = y.reshape(N, R, R, Cc // (R * R), H // R, W // R)
    y = jnp.transpose(y, (0, 3, 4, 1, 5, 2)).reshape(N, Cc // (R * R), H, W)
    return y


# --------------------------------------------------------------------------
if __name__ == "__main__":
    key = jax.random.PRNGKey(0)
    kx, kp = jax.random.split(key)
    params = init_params(kp)
    kparams = prepare_kernel_params(params)     # weight expansion hoisted out of jit

    # C must be 3 (pack.conv2d expects R^2 * 3 * D = 24 input channels)
    x = jax.random.normal(kx, (2, 3, 16, 16), jnp.float32)   # NCHW

    fwd = jax.jit(lambda xx: pack_unpack_forward(xx, kparams))
    out = jax.block_until_ready(fwd(x))

    ref = pack_unpack_ref(x, params)

    assert out.shape == (2, 3, 16, 16), out.shape
    assert bool(jnp.all(jnp.isfinite(out)))
    max_err = float(jnp.max(jnp.abs(out - ref)))
    assert bool(jnp.allclose(out, ref, rtol=2e-2, atol=2e-2)), max_err
    print("KERNEL_OK")
</pallas_src>

<mosaic_0001>
module attributes {stable_mosaic.version = 11 : i64} {
  func.func @_pack_unpack_kernel(%arg0: i32, %arg1: memref<1x64x12xf32, #tpu.memory_space<vmem>>, %arg2: memref<3x3x12x24xf32, #tpu.memory_space<vmem>>, %arg3: memref<1x24xf32, #tpu.memory_space<vmem>>, %arg4: memref<3x3x24x4xf32, #tpu.memory_space<vmem>>, %arg5: memref<1x4xf32, #tpu.memory_space<vmem>>, %arg6: memref<3x3x4x6xf32, #tpu.memory_space<vmem>>, %arg7: memref<1x6xf32, #tpu.memory_space<vmem>>, %arg8: memref<3x3x6x12xf32, #tpu.memory_space<vmem>>, %arg9: memref<1x12xf32, #tpu.memory_space<vmem>>, %arg10: memref<1x64x12xf32, #tpu.memory_space<vmem>>, %arg11: memref<10x10x12xf32, #tpu.memory_space<vmem>>, %arg12: memref<10x10x24xf32, #tpu.memory_space<vmem>>, %arg13: memref<10x10x4xf32, #tpu.memory_space<vmem>>, %arg14: memref<10x10x6xf32, #tpu.memory_space<vmem>>) attributes {dimension_semantics = [#tpu.dimension_semantics<parallel>], iteration_bounds = array<i64: 2>, scalar_prefetch = 0 : i64, scratch_operands = 4 : i64, tpu.core_type = #tpu.core_type<tc>, window_params = [{transform_indices = @transform_0, window_bounds = array<i64: 1, 64, 12>}, {pipeline_mode = #tpu.pipeline_mode<synchronous>, transform_indices = @transform_1, window_bounds = array<i64: 3, 3, 12, 24>}, {pipeline_mode = #tpu.pipeline_mode<synchronous>, transform_indices = @transform_2, window_bounds = array<i64: 1, 24>}, {pipeline_mode = #tpu.pipeline_mode<synchronous>, transform_indices = @transform_3, window_bounds = array<i64: 3, 3, 24, 4>}, {pipeline_mode = #tpu.pipeline_mode<synchronous>, transform_indices = @transform_4, window_bounds = array<i64: 1, 4>}, {pipeline_mode = #tpu.pipeline_mode<synchronous>, transform_indices = @transform_5, window_bounds = array<i64: 3, 3, 4, 6>}, {pipeline_mode = #tpu.pipeline_mode<synchronous>, transform_indices = @transform_6, window_bounds = array<i64: 1, 6>}, {pipeline_mode = #tpu.pipeline_mode<synchronous>, transform_indices = @transform_7, window_bounds = array<i64: 3, 3, 6, 12>}, {pipeline_mode = #tpu.pipeline_mode<synchronous>, transform_indices = @transform_8, window_bounds = array<i64: 1, 12>}, {transform_indices = @transform_9, window_bounds = array<i64: 1, 64, 12>}]} {
    %c0 = arith.constant 0 : index
    %c0_0 = arith.constant 0 : index
    %c0_1 = arith.constant 0 : index
    %0 = vector.load %arg1[%c0, %c0_0, %c0_1] : memref<1x64x12xf32, #tpu.memory_space<vmem>>, vector<1x64x12xf32>
    %1 = vector.shape_cast %0 : vector<1x64x12xf32> to vector<64x12xf32>
    %cst = arith.constant 0.000000e+00 : f32
    %2 = vector.broadcast %cst : f32 to vector<10x10x12xf32>
    %c0_2 = arith.constant 0 : index
    %c0_3 = arith.constant 0 : index
    %c0_4 = arith.constant 0 : index
    %3 = vector.load %arg11[%c0_2, %c0_3, %c0_4] : memref<10x10x12xf32, #tpu.memory_space<vmem>>, vector<10x10x12xf32>
    tpu.vector_store %arg11[%c0_2, %c0_3, %c0_4], %2 {strides = array<i32>} : memref<10x10x12xf32, #tpu.memory_space<vmem>>, vector<10x10x12xf32>,
    %4 = vector.shape_cast %1 : vector<64x12xf32> to vector<8x8x12xf32>
    %c1 = arith.constant 1 : index
    %c1_5 = arith.constant 1 : index
    %c0_6 = arith.constant 0 : index
    %5 = vector.load %arg11[%c1, %c1_5, %c0_6] : memref<10x10x12xf32, #tpu.memory_space<vmem>>, vector<8x8x12xf32>
    tpu.vector_store %arg11[%c1, %c1_5, %c0_6], %4 {strides = array<i32>} : memref<10x10x12xf32, #tpu.memory_space<vmem>>, vector<8x8x12xf32>,
    %cst_7 = arith.constant 0.000000e+00 : f32
    %6 = vector.broadcast %cst_7 : f32 to vector<64x24xf32>
    %c0_8 = arith.constant 0 : index
    %c0_9 = arith.constant 0 : index
    %c0_10 = arith.constant 0 : index
    %7 = vector.load %arg11[%c0_8, %c0_9, %c0_10] : memref<10x10x12xf32, #tpu.memory_space<vmem>>, vector<8x8x12xf32>
    %8 = vector.shape_cast %7 : vector<8x8x12xf32> to vector<64x12xf32>
    %c0_11 = arith.constant 0 : index
    %c0_12 = arith.constant 0 : index
    %c0_13 = arith.constant 0 : index
    %c0_14 = arith.constant 0 : index
    %9 = vector.load %arg2[%c0_11, %c0_12, %c0_13, %c0_14] : memref<3x3x12x24xf32, #tpu.memory_space<vmem>>, vector<1x1x12x24xf32>
    %10 = vector.shape_cast %9 : vector<1x1x12x24xf32> to vector<12x24xf32>
    %cst_15 = arith.constant dense<0.000000e+00> : vector<64x24xf32>
    %11 = tpu.matmul %8, %10, %cst_15 {dimension_numbers = #tpu.dot_dimension_numbers<[1], [0], [0], [1], [0, 0, 1, 1], [], []>} : vector<64x12xf32>, vector<12x24xf32>, vector<64x24xf32> -> vector<64x24xf32>
    %12 = arith.addf %6, %11 : vector<64x24xf32>
    %c0_16 = arith.constant 0 : index
    %c1_17 = arith.constant 1 : index
    %c0_18 = arith.constant 0 : index
    %13 = vector.load %arg11[%c0_16, %c1_17, %c0_18] : memref<10x10x12xf32, #tpu.memory_space<vmem>>, vector<8x8x12xf32>
    %14 = vector.shape_cast %13 : vector<8x8x12xf32> to vector<64x12xf32>
    %c0_19 = arith.constant 0 : index
    %c1_20 = arith.constant 1 : index
    %c0_21 = arith.constant 0 : index
    %c0_22 = arith.constant 0 : index
    %15 = vector.load %arg2[%c0_19, %c1_20, %c0_21, %c0_22] : memref<3x3x12x24xf32, #tpu.memory_space<vmem>>, vector<1x1x12x24xf32>
    %16 = vector.shape_cast %15 : vector<1x1x12x24xf32> to vector<12x24xf32>
    %cst_23 = arith.constant dense<0.000000e+00> : vector<64x24xf32>
    %17 = tpu.matmul %14, %16, %cst_23 {dimension_numbers = #tpu.dot_dimension_numbers<[1], [0], [0], [1], [0, 0, 1, 1], [], []>} : vector<64x12xf32>, vector<12x24xf32>, vector<64x24xf32> -> vector<64x24xf32>
    %18 = arith.addf %12, %17 : vector<64x24xf32>
    %c0_24 = arith.constant 0 : index
    %c2 = arith.constant 2 : index
    %c0_25 = arith.constant 0 : index
    %19 = vector.load %arg11[%c0_24, %c2, %c0_25] : memref<10x10x12xf32, #tpu.memory_space<vmem>>, vector<8x8x12xf32>
    %20 = vector.shape_cast %19 : vector<8x8x12xf32> to vector<64x12xf32>
    %c0_26 = arith.constant 0 : index
    %c2_27 = arith.constant 2 : index
    %c0_28 = arith.constant 0 : index
    %c0_29 = arith.constant 0 : index
    %21 = vector.load %arg2[%c0_26, %c2_27, %c0_28, %c0_29] : memref<3x3x12x24xf32, #tpu.memory_space<vmem>>, vector<1x1x12x24xf32>
    %22 = vector.shape_cast %21 : vector<1x1x12x24xf32> to vector<12x24xf32>
    %cst_30 = arith.constant dense<0.000000e+00> : vector<64x24xf32>
    %23 = tpu.matmul %20, %22, %cst_30 {dimension_numbers = #tpu.dot_dimension_numbers<[1], [0], [0], [1], [0, 0, 1, 1], [], []>} : vector<64x12xf32>, vector<12x24xf32>, vector<64x24xf32> -> vector<64x24xf32>
    %24 = arith.addf %18, %23 : vector<64x24xf32>
    %c1_31 = arith.constant 1 : index
    %c0_32 = arith.constant 0 : index
    %c0_33 = arith.constant 0 : index
    %25 = vector.load %arg11[%c1_31, %c0_32, %c0_33] : memref<10x10x12xf32, #tpu.memory_space<vmem>>, vector<8x8x12xf32>
    %26 = vector.shape_cast %25 : vector<8x8x12xf32> to vector<64x12xf32>
    %c1_34 = arith.constant 1 : index
    %c0_35 = arith.constant 0 : index
    %c0_36 = arith.constant 0 : index
    %c0_37 = arith.constant 0 : index
    %27 = vector.load %arg2[%c1_34, %c0_35, %c0_36, %c0_37] : memref<3x3x12x24xf32, #tpu.memory_space<vmem>>, vector<1x1x12x24xf32>
    %28 = vector.shape_cast %27 : vector<1x1x12x24xf32> to vector<12x24xf32>
    %cst_38 = arith.constant dense<0.000000e+00> : vector<64x24xf32>
    %29 = tpu.matmul %26, %28, %cst_38 {dimension_numbers = #tpu.dot_dimension_numbers<[1], [0], [0], [1], [0, 0, 1, 1], [], []>} : vector<64x12xf32>, vector<12x24xf32>, vector<64x24xf32> -> vector<64x24xf32>
    %30 = arith.addf %24, %29 : vector<64x24xf32>
    %c1_39 = arith.constant 1 : index
    %c1_40 = arith.constant 1 : index
    %c0_41 = arith.constant 0 : index
    %31 = vector.load %arg11[%c1_39, %c1_40, %c0_41] : memref<10x10x12xf32, #tpu.memory_space<vmem>>, vector<8x8x12xf32>
    %32 = vector.shape_cast %31 : vector<8x8x12xf32> to vector<64x12xf32>
    %c1_42 = arith.constant 1 : index
    %c1_43 = arith.constant 1 : index
    %c0_44 = arith.constant 0 : index
    %c0_45 = arith.constant 0 : index
    %33 = vector.load %arg2[%c1_42, %c1_43, %c0_44, %c0_45] : memref<3x3x12x24xf32, #tpu.memory_space<vmem>>, vector<1x1x12x24xf32>
    %34 = vector.shape_cast %33 : vector<1x1x12x24xf32> to vector<12x24xf32>
    %cst_46 = arith.constant dense<0.000000e+00> : vector<64x24xf32>
    %35 = tpu.matmul %32, %34, %cst_46 {dimension_numbers = #tpu.dot_dimension_numbers<[1], [0], [0], [1], [0, 0, 1, 1], [], []>} : vector<64x12xf32>, vector<12x24xf32>, vector<64x24xf32> -> vector<64x24xf32>
    %36 = arith.addf %30, %35 : vector<64x24xf32>
    %c1_47 = arith.constant 1 : index
    %c2_48 = arith.constant 2 : index
    %c0_49 = arith.constant 0 : index
    %37 = vector.load %arg11[%c1_47, %c2_48, %c0_49] : memref<10x10x12xf32, #tpu.memory_space<vmem>>, vector<8x8x12xf32>
    %38 = vector.shape_cast %37 : vector<8x8x12xf32> to vector<64x12xf32>
    %c1_50 = arith.constant 1 : index
    %c2_51 = arith.constant 2 : index
    %c0_52 = arith.constant 0 : index
    %c0_53 = arith.constant 0 : index
    %39 = vector.load %arg2[%c1_50, %c2_51, %c0_52, %c0_53] : memref<3x3x12x24xf32, #tpu.memory_space<vmem>>, vector<1x1x12x24xf32>
    %40 = vector.shape_cast %39 : vector<1x1x12x24xf32> to vector<12x24xf32>
    %cst_54 = arith.constant dense<0.000000e+00> : vector<64x24xf32>
    %41 = tpu.matmul %38, %40, %cst_54 {dimension_numbers = #tpu.dot_dimension_numbers<[1], [0], [0], [1], [0, 0, 1, 1], [], []>} : vector<64x12xf32>, vector<12x24xf32>, vector<64x24xf32> -> vector<64x24xf32>
    %42 = arith.addf %36, %41 : vector<64x24xf32>
    %c2_55 = arith.constant 2 : index
    %c0_56 = arith.constant 0 : index
    %c0_57 = arith.constant 0 : index
    %43 = vector.load %arg11[%c2_55, %c0_56, %c0_57] : memref<10x10x12xf32, #tpu.memory_space<vmem>>, vector<8x8x12xf32>
    %44 = vector.shape_cast %43 : vector<8x8x12xf32> to vector<64x12xf32>
    %c2_58 = arith.constant 2 : index
    %c0_59 = arith.constant 0 : index
    %c0_60 = arith.constant 0 : index
    %c0_61 = arith.constant 0 : index
    %45 = vector.load %arg2[%c2_58, %c0_59, %c0_60, %c0_61] : memref<3x3x12x24xf32, #tpu.memory_space<vmem>>, vector<1x1x12x24xf32>
    %46 = vector.shape_cast %45 : vector<1x1x12x24xf32> to vector<12x24xf32>
    %cst_62 = arith.constant dense<0.000000e+00> : vector<64x24xf32>
    %47 = tpu.matmul %44, %46, %cst_62 {dimension_numbers = #tpu.dot_dimension_numbers<[1], [0], [0], [1], [0, 0, 1, 1], [], []>} : vector<64x12xf32>, vector<12x24xf32>, vector<64x24xf32> -> vector<64x24xf32>
    %48 = arith.addf %42, %47 : vector<64x24xf32>
    %c2_63 = arith.constant 2 : index
    %c1_64 = arith.constant 1 : index
    %c0_65 = arith.constant 0 : index
    %49 = vector.load %arg11[%c2_63, %c1_64, %c0_65] : memref<10x10x12xf32, #tpu.memory_space<vmem>>, vector<8x8x12xf32>
    %50 = vector.shape_cast %49 : vector<8x8x12xf32> to vector<64x12xf32>
    %c2_66 = arith.constant 2 : index
    %c1_67 = arith.constant 1 : index
    %c0_68 = arith.constant 0 : index
    %c0_69 = arith.constant 0 : index
    %51 = vector.load %arg2[%c2_66, %c1_67, %c0_68, %c0_69] : memref<3x3x12x24xf32, #tpu.memory_space<vmem>>, vector<1x1x12x24xf32>
    %52 = vector.shape_cast %51 : vector<1x1x12x24xf32> to vector<12x24xf32>
    %cst_70 = arith.constant dense<0.000000e+00> : vector<64x24xf32>
    %53 = tpu.matmul %50, %52, %cst_70 {dimension_numbers = #tpu.dot_dimension_numbers<[1], [0], [0], [1], [0, 0, 1, 1], [], []>} : vector<64x12xf32>, vector<12x24xf32>, vector<64x24xf32> -> vector<64x24xf32>
    %54 = arith.addf %48, %53 : vector<64x24xf32>
    %c2_71 = arith.constant 2 : index
    %c2_72 = arith.constant 2 : index
    %c0_73 = arith.constant 0 : index
    %55 = vector.load %arg11[%c2_71, %c2_72, %c0_73] : memref<10x10x12xf32, #tpu.memory_space<vmem>>, vector<8x8x12xf32>
    %56 = vector.shape_cast %55 : vector<8x8x12xf32> to vector<64x12xf32>
    %c2_74 = arith.constant 2 : index
    %c2_75 = arith.constant 2 : index
    %c0_76 = arith.constant 0 : index
    %c0_77 = arith.constant 0 : index
    %57 = vector.load %arg2[%c2_74, %c2_75, %c0_76, %c0_77] : memref<3x3x12x24xf32, #tpu.memory_space<vmem>>, vector<1x1x12x24xf32>
    %58 = vector.shape_cast %57 : vector<1x1x12x24xf32> to vector<12x24xf32>
    %cst_78 = arith.constant dense<0.000000e+00> : vector<64x24xf32>
    %59 = tpu.matmul %56, %58, %cst_78 {dimension_numbers = #tpu.dot_dimension_numbers<[1], [0], [0], [1], [0, 0, 1, 1], [], []>} : vector<64x12xf32>, vector<12x24xf32>, vector<64x24xf32> -> vector<64x24xf32>
    %60 = arith.addf %54, %59 : vector<64x24xf32>
    %c0_79 = arith.constant 0 : index
    %c0_80 = arith.constant 0 : index
    %61 = vector.load %arg3[%c0_79, %c0_80] : memref<1x24xf32, #tpu.memory_space<vmem>>, vector<1x24xf32>
    %62 = vector.broadcast %61 : vector<1x24xf32> to vector<64x24xf32>
    %63 = arith.addf %60, %62 : vector<64x24xf32>
    %cst_81 = arith.constant 0.000000e+00 : f32
    %64 = vector.broadcast %cst_81 : f32 to vector<10x10x24xf32>
    %c0_82 = arith.constant 0 : index
    %c0_83 = arith.constant 0 : index
    %c0_84 = arith.constant 0 : index
    %65 = vector.load %arg12[%c0_82, %c0_83, %c0_84] : memref<10x10x24xf32, #tpu.memory_space<vmem>>, vector<10x10x24xf32>
    tpu.vector_store %arg12[%c0_82, %c0_83, %c0_84], %64 {strides = array<i32>} : memref<10x10x24xf32, #tpu.memory_space<vmem>>, vector<10x10x24xf32>,
    %66 = vector.shape_cast %63 : vector<64x24xf32> to vector<8x8x24xf32>
    %c1_85 = arith.constant 1 : index
    %c1_86 = arith.constant 1 : index
    %c0_87 = arith.constant 0 : index
    %67 = vector.load %arg12[%c1_85, %c1_86, %c0_87] : memref<10x10x24xf32, #tpu.memory_space<vmem>>, vector<8x8x24xf32>
    tpu.vector_store %arg12[%c1_85, %c1_86, %c0_87], %66 {strides = array<i32>} : memref<10x10x24xf32, #tpu.memory_space<vmem>>, vector<8x8x24xf32>,
    %cst_88 = arith.constant 0.000000e+00 : f32
    %68 = vector.broadcast %cst_88 : f32 to vector<64x4xf32>
    %c0_89 = arith.constant 0 : index
    %c0_90 = arith.constant 0 : index
    %c0_91 = arith.constant 0 : index
    %69 = vector.load %arg12[%c0_89, %c0_90, %c0_91] : memref<10x10x24xf32, #tpu.memory_space<vmem>>, vector<8x8x24xf32>
    %70 = vector.shape_cast %69 : vector<8x8x24xf32> to vector<64x24xf32>
    %c0_92 = arith.constant 0 : index
    %c0_93 = arith.constant 0 : index
    %c0_94 = arith.constant 0 : index
    %c0_95 = arith.constant 0 : index
    %71 = vector.load %arg4[%c0_92, %c0_93, %c0_94, %c0_95] : memref<3x3x24x4xf32, #tpu.memory_space<vmem>>, vector<1x1x24x4xf32>
    %72 = vector.shape_cast %71 : vector<1x1x24x4xf32> to vector<24x4xf32>
    %cst_96 = arith.constant dense<0.000000e+00> : vector<64x4xf32>
    %73 = tpu.matmul %70, %72, %cst_96 {dimension_numbers = #tpu.dot_dimension_numbers<[1], [0], [0], [1], [0, 0, 1, 1], [], []>} : vector<64x24xf32>, vector<24x4xf32>, vector<64x4xf32> -> vector<64x4xf32>
    %74 = arith.addf %68, %73 : vector<64x4xf32>
    %c0_97 = arith.constant 0 : index
    %c1_98 = arith.constant 1 : index
    %c0_99 = arith.constant 0 : index
    %75 = vector.load %arg12[%c0_97, %c1_98, %c0_99] : memref<10x10x24xf32, #tpu.memory_space<vmem>>, vector<8x8x24xf32>
    %76 = vector.shape_cast %75 : vector<8x8x24xf32> to vector<64x24xf32>
    %c0_100 = arith.constant 0 : index
    %c1_101 = arith.constant 1 : index
    %c0_102 = arith.constant 0 : index
    %c0_103 = arith.constant 0 : index
    %77 = vector.load %arg4[%c0_100, %c1_101, %c0_102, %c0_103] : memref<3x3x24x4xf32, #tpu.memory_space<vmem>>, vector<1x1x24x4xf32>
    %78 = vector.shape_cast %77 : vector<1x1x24x4xf32> to vector<24x4xf32>
    %cst_104 = arith.constant dense<0.000000e+00> : vector<64x4xf32>
    %79 = tpu.matmul %76, %78, %cst_104 {dimension_numbers = #tpu.dot_dimension_numbers<[1], [0], [0], [1], [0, 0, 1, 1], [], []>} : vector<64x24xf32>, vector<24x4xf32>, vector<64x4xf32> -> vector<64x4xf32>
    %80 = arith.addf %74, %79 : vector<64x4xf32>
    %c0_105 = arith.constant 0 : index
    %c2_106 = arith.constant 2 : index
    %c0_107 = arith.constant 0 : index
    %81 = vector.load %arg12[%c0_105, %c2_106, %c0_107] : memref<10x10x24xf32, #tpu.memory_space<vmem>>, vector<8x8x24xf32>
    %82 = vector.shape_cast %81 : vector<8x8x24xf32> to vector<64x24xf32>
    %c0_108 = arith.constant 0 : index
    %c2_109 = arith.constant 2 : index
    %c0_110 = arith.constant 0 : index
    %c0_111 = arith.constant 0 : index
    %83 = vector.load %arg4[%c0_108, %c2_109, %c0_110, %c0_111] : memref<3x3x24x4xf32, #tpu.memory_space<vmem>>, vector<1x1x24x4xf32>
    %84 = vector.shape_cast %83 : vector<1x1x24x4xf32> to vector<24x4xf32>
    %cst_112 = arith.constant dense<0.000000e+00> : vector<64x4xf32>
    %85 = tpu.matmul %82, %84, %cst_112 {dimension_numbers = #tpu.dot_dimension_numbers<[1], [0], [0], [1], [0, 0, 1, 1], [], []>} : vector<64x24xf32>, vector<24x4xf32>, vector<64x4xf32> -> vector<64x4xf32>
    %86 = arith.addf %80, %85 : vector<64x4xf32>
    %c1_113 = arith.constant 1 : index
    %c0_114 = arith.constant 0 : index
    %c0_115 = arith.constant 0 : index
    %87 = vector.load %arg12[%c1_113, %c0_114, %c0_115] : memref<10x10x24xf32, #tpu.memory_space<vmem>>, vector<8x8x24xf32>
    %88 = vector.shape_cast %87 : vector<8x8x24xf32> to vector<64x24xf32>
    %c1_116 = arith.constant 1 : index
    %c0_117 = arith.constant 0 : index
    %c0_118 = arith.constant 0 : index
    %c0_119 = arith.constant 0 : index
    %89 = vector.load %arg4[%c1_116, %c0_117, %c0_118, %c0_119] : memref<3x3x24x4xf32, #tpu.memory_space<vmem>>, vector<1x1x24x4xf32>
    %90 = vector.shape_cast %89 : vector<1x1x24x4xf32> to vector<24x4xf32>
    %cst_120 = arith.constant dense<0.000000e+00> : vector<64x4xf32>
    %91 = tpu.matmul %88, %90, %cst_120 {dimension_numbers = #tpu.dot_dimension_numbers<[1], [0], [0], [1], [0, 0, 1, 1], [], []>} : vector<64x24xf32>, vector<24x4xf32>, vector<64x4xf32> -> vector<64x4xf32>
    %92 = arith.addf %86, %91 : vector<64x4xf32>
    %c1_121 = arith.constant 1 : index
    %c1_122 = arith.constant 1 : index
    %c0_123 = arith.constant 0 : index
    %93 = vector.load %arg12[%c1_121, %c1_122, %c0_123] : memref<10x10x24xf32, #tpu.memory_space<vmem>>, vector<8x8x24xf32>
    %94 = vector.shape_cast %93 : vector<8x8x24xf32> to vector<64x24xf32>
    %c1_124 = arith.constant 1 : index
    %c1_125 = arith.constant 1 : index
    %c0_126 = arith.constant 0 : index
    %c0_127 = arith.constant 0 : index
    %95 = vector.load %arg4[%c1_124, %c1_125, %c0_126, %c0_127] : memref<3x3x24x4xf32, #tpu.memory_space<vmem>>, vector<1x1x24x4xf32>
    %96 = vector.shape_cast %95 : vector<1x1x24x4xf32> to vector<24x4xf32>
    %cst_128 = arith.constant dense<0.000000e+00> : vector<64x4xf32>
    %97 = tpu.matmul %94, %96, %cst_128 {dimension_numbers = #tpu.dot_dimension_numbers<[1], [0], [0], [1], [0, 0, 1, 1], [], []>} : vector<64x24xf32>, vector<24x4xf32>, vector<64x4xf32> -> vector<64x4xf32>
    %98 = arith.addf %92, %97 : vector<64x4xf32>
    %c1_129 = arith.constant 1 : index
    %c2_130 = arith.constant 2 : index
    %c0_131 = arith.constant 0 : index
    %99 = vector.load %arg12[%c1_129, %c2_130, %c0_131] : memref<10x10x24xf32, #tpu.memory_space<vmem>>, vector<8x8x24xf32>
    %100 = vector.shape_cast %99 : vector<8x8x24xf32> to vector<64x24xf32>
    %c1_132 = arith.constant 1 : index
    %c2_133 = arith.constant 2 : index
    %c0_134 = arith.constant 0 : index
    %c0_135 = arith.constant 0 : index
    %101 = vector.load %arg4[%c1_132, %c2_133, %c0_134, %c0_135] : memref<3x3x24x4xf32, #tpu.memory_space<vmem>>, vector<1x1x24x4xf32>
    %102 = vector.shape_cast %101 : vector<1x1x24x4xf32> to vector<24x4xf32>
    %cst_136 = arith.constant dense<0.000000e+00> : vector<64x4xf32>
    %103 = tpu.matmul %100, %102, %cst_136 {dimension_numbers = #tpu.dot_dimension_numbers<[1], [0], [0], [1], [0, 0, 1, 1], [], []>} : vector<64x24xf32>, vector<24x4xf32>, vector<64x4xf32> -> vector<64x4xf32>
    %104 = arith.addf %98, %103 : vector<64x4xf32>
    %c2_137 = arith.constant 2 : index
    %c0_138 = arith.constant 0 : index
    %c0_139 = arith.constant 0 : index
    %105 = vector.load %arg12[%c2_137, %c0_138, %c0_139] : memref<10x10x24xf32, #tpu.memory_space<vmem>>, vector<8x8x24xf32>
    %106 = vector.shape_cast %105 : vector<8x8x24xf32> to vector<64x24xf32>
    %c2_140 = arith.constant 2 : index
    %c0_141 = arith.constant 0 : index
    %c0_142 = arith.constant 0 : index
    %c0_143 = arith.constant 0 : index
    %107 = vector.load %arg4[%c2_140, %c0_141, %c0_142, %c0_143] : memref<3x3x24x4xf32, #tpu.memory_space<vmem>>, vector<1x1x24x4xf32>
    %108 = vector.shape_cast %107 : vector<1x1x24x4xf32> to vector<24x4xf32>
    %cst_144 = arith.constant dense<0.000000e+00> : vector<64x4xf32>
    %109 = tpu.matmul %106, %108, %cst_144 {dimension_numbers = #tpu.dot_dimension_numbers<[1], [0], [0], [1], [0, 0, 1, 1], [], []>} : vector<64x24xf32>, vector<24x4xf32>, vector<64x4xf32> -> vector<64x4xf32>
    %110 = arith.addf %104, %109 : vector<64x4xf32>
    %c2_145 = arith.constant 2 : index
    %c1_146 = arith.constant 1 : index
    %c0_147 = arith.constant 0 : index
    %111 = vector.load %arg12[%c2_145, %c1_146, %c0_147] : memref<10x10x24xf32, #tpu.memory_space<vmem>>, vector<8x8x24xf32>
    %112 = vector.shape_cast %111 : vector<8x8x24xf32> to vector<64x24xf32>
    %c2_148 = arith.constant 2 : index
    %c1_149 = arith.constant 1 : index
    %c0_150 = arith.constant 0 : index
    %c0_151 = arith.constant 0 : index
    %113 = vector.load %arg4[%c2_148, %c1_149, %c0_150, %c0_151] : memref<3x3x24x4xf32, #tpu.memory_space<vmem>>, vector<1x1x24x4xf32>
    %114 = vector.shape_cast %113 : vector<1x1x24x4xf32> to vector<24x4xf32>
    %cst_152 = arith.constant dense<0.000000e+00> : vector<64x4xf32>
    %115 = tpu.matmul %112, %114, %cst_152 {dimension_numbers = #tpu.dot_dimension_numbers<[1], [0], [0], [1], [0, 0, 1, 1], [], []>} : vector<64x24xf32>, vector<24x4xf32>, vector<64x4xf32> -> vector<64x4xf32>
    %116 = arith.addf %110, %115 : vector<64x4xf32>
    %c2_153 = arith.constant 2 : index
    %c2_154 = arith.constant 2 : index
    %c0_155 = arith.constant 0 : index
    %117 = vector.load %arg12[%c2_153, %c2_154, %c0_155] : memref<10x10x24xf32, #tpu.memory_space<vmem>>, vector<8x8x24xf32>
    %118 = vector.shape_cast %117 : vector<8x8x24xf32> to vector<64x24xf32>
    %c2_156 = arith.constant 2 : index
    %c2_157 = arith.constant 2 : index
    %c0_158 = arith.constant 0 : index
    %c0_159 = arith.constant 0 : index
    %119 = vector.load %arg4[%c2_156, %c2_157, %c0_158, %c0_159] : memref<3x3x24x4xf32, #tpu.memory_space<vmem>>, vector<1x1x24x4xf32>
    %120 = vector.shape_cast %119 : vector<1x1x24x4xf32> to vector<24x4xf32>
    %cst_160 = arith.constant dense<0.000000e+00> : vector<64x4xf32>
    %121 = tpu.matmul %118, %120, %cst_160 {dimension_numbers = #tpu.dot_dimension_numbers<[1], [0], [0], [1], [0, 0, 1, 1], [], []>} : vector<64x24xf32>, vector<24x4xf32>, vector<64x4xf32> -> vector<64x4xf32>
    %122 = arith.addf %116, %121 : vector<64x4xf32>
    %c0_161 = arith.constant 0 : index
    %c0_162 = arith.constant 0 : index
    %123 = vector.load %arg5[%c0_161, %c0_162] : memref<1x4xf32, #tpu.memory_space<vmem>>, vector<1x4xf32>
    %124 = vector.broadcast %123 : vector<1x4xf32> to vector<64x4xf32>
    %125 = arith.addf %122, %124 : vector<64x4xf32>
    %cst_163 = arith.constant 0.000000e+00 : f32
    %126 = vector.broadcast %cst_163 : f32 to vector<10x10x4xf32>
    %c0_164 = arith.constant 0 : index
    %c0_165 = arith.constant 0 : index
    %c0_166 = arith.constant 0 : index
    %127 = vector.load %arg13[%c0_164, %c0_165, %c0_166] : memref<10x10x4xf32, #tpu.memory_space<vmem>>, vector<10x10x4xf32>
    tpu.vector_store %arg13[%c0_164, %c0_165, %c0_166], %126 {strides = array<i32>} : memref<10x10x4xf32, #tpu.memory_space<vmem>>, vector<10x10x4xf32>,
    %128 = vector.shape_cast %125 : vector<64x4xf32> to vector<8x8x4xf32>
    %c1_167 = arith.constant 1 : index
    %c1_168 = arith.constant 1 : index
    %c0_169 = arith.constant 0 : index
    %129 = vector.load %arg13[%c1_167, %c1_168, %c0_169] : memref<10x10x4xf32, #tpu.memory_space<vmem>>, vector<8x8x4xf32>
    tpu.vector_store %arg13[%c1_167, %c1_168, %c0_169], %128 {strides = array<i32>} : memref<10x10x4xf32, #tpu.memory_space<vmem>>, vector<8x8x4xf32>,
    %cst_170 = arith.constant 0.000000e+00 : f32
    %130 = vector.broadcast %cst_170 : f32 to vector<64x6xf32>
    %c0_171 = arith.constant 0 : index
    %c0_172 = arith.constant 0 : index
    %c0_173 = arith.constant 0 : index
    %131 = vector.load %arg13[%c0_171, %c0_172, %c0_173] : memref<10x10x4xf32, #tpu.memory_space<vmem>>, vector<8x8x4xf32>
    %132 = vector.shape_cast %131 : vector<8x8x4xf32> to vector<64x4xf32>
    %c0_174 = arith.constant 0 : index
    %c0_175 = arith.constant 0 : index
    %c0_176 = arith.constant 0 : index
    %c0_177 = arith.constant 0 : index
    %133 = vector.load %arg6[%c0_174, %c0_175, %c0_176, %c0_177] : memref<3x3x4x6xf32, #tpu.memory_space<vmem>>, vector<1x1x4x6xf32>
    %134 = vector.shape_cast %133 : vector<1x1x4x6xf32> to vector<4x6xf32>
    %cst_178 = arith.constant dense<0.000000e+00> : vector<64x6xf32>
    %135 = tpu.matmul %132, %134, %cst_178 {dimension_numbers = #tpu.dot_dimension_numbers<[1], [0], [0], [1], [0, 0, 1, 1], [], []>} : vector<64x4xf32>, vector<4x6xf32>, vector<64x6xf32> -> vector<64x6xf32>
    %136 = arith.addf %130, %135 : vector<64x6xf32>
    %c0_179 = arith.constant 0 : index
    %c1_180 = arith.constant 1 : index
    %c0_181 = arith.constant 0 : index
    %137 = vector.load %arg13[%c0_179, %c1_180, %c0_181] : memref<10x10x4xf32, #tpu.memory_space<vmem>>, vector<8x8x4xf32>
    %138 = vector.shape_cast %137 : vector<8x8x4xf32> to vector<64x4xf32>
    %c0_182 = arith.constant 0 : index
    %c1_183 = arith.constant 1 : index
    %c0_184 = arith.constant 0 : index
    %c0_185 = arith.constant 0 : index
    %139 = vector.load %arg6[%c0_182, %c1_183, %c0_184, %c0_185] : memref<3x3x4x6xf32, #tpu.memory_space<vmem>>, vector<1x1x4x6xf32>
    %140 = vector.shape_cast %139 : vector<1x1x4x6xf32> to vector<4x6xf32>
    %cst_186 = arith.constant dense<0.000000e+00> : vector<64x6xf32>
    %141 = tpu.matmul %138, %140, %cst_186 {dimension_numbers = #tpu.dot_dimension_numbers<[1], [0], [0], [1], [0, 0, 1, 1], [], []>} : vector<64x4xf32>, vector<4x6xf32>, vector<64x6xf32> -> vector<64x6xf32>
    %142 = arith.addf %136, %141 : vector<64x6xf32>
    %c0_187 = arith.constant 0 : index
    %c2_188 = arith.constant 2 : index
    %c0_189 = arith.constant 0 : index
    %143 = vector.load %arg13[%c0_187, %c2_188, %c0_189] : memref<10x10x4xf32, #tpu.memory_space<vmem>>, vector<8x8x4xf32>
    %144 = vector.shape_cast %143 : vector<8x8x4xf32> to vector<64x4xf32>
    %c0_190 = arith.constant 0 : index
    %c2_191 = arith.constant 2 : index
    %c0_192 = arith.constant 0 : index
    %c0_193 = arith.constant 0 : index
    %145 = vector.load %arg6[%c0_190, %c2_191, %c0_192, %c0_193] : memref<3x3x4x6xf32, #tpu.memory_space<vmem>>, vector<1x1x4x6xf32>
    %146 = vector.shape_cast %145 : vector<1x1x4x6xf32> to vector<4x6xf32>
    %cst_194 = arith.constant dense<0.000000e+00> : vector<64x6xf32>
    %147 = tpu.matmul %144, %146, %cst_194 {dimension_numbers = #tpu.dot_dimension_numbers<[1], [0], [0], [1], [0, 0, 1, 1], [], []>} : vector<64x4xf32>, vector<4x6xf32>, vector<64x6xf32> -> vector<64x6xf32>
    %148 = arith.addf %142, %147 : vector<64x6xf32>
    %c1_195 = arith.constant 1 : index
    %c0_196 = arith.constant 0 : index
    %c0_197 = arith.constant 0 : index
    %149 = vector.load %arg13[%c1_195, %c0_196, %c0_197] : memref<10x10x4xf32, #tpu.memory_space<vmem>>, vector<8x8x4xf32>
    %150 = vector.shape_cast %149 : vector<8x8x4xf32> to vector<64x4xf32>
    %c1_198 = arith.constant 1 : index
    %c0_199 = arith.constant 0 : index
    %c0_200 = arith.constant 0 : index
    %c0_201 = arith.constant 0 : index
    %151 = vector.load %arg6[%c1_198, %c0_199, %c0_200, %c0_201] : memref<3x3x4x6xf32, #tpu.memory_space<vmem>>, vector<1x1x4x6xf32>
    %152 = vector.shape_cast %151 : vector<1x1x4x6xf32> to vector<4x6xf32>
    %cst_202 = arith.constant dense<0.000000e+00> : vector<64x6xf32>
    %153 = tpu.matmul %150, %152, %cst_202 {dimension_numbers = #tpu.dot_dimension_numbers<[1], [0], [0], [1], [0, 0, 1, 1], [], []>} : vector<64x4xf32>, vector<4x6xf32>, vector<64x6xf32> -> vector<64x6xf32>
    %154 = arith.addf %148, %153 : vector<64x6xf32>
    %c1_203 = arith.constant 1 : index
    %c1_204 = arith.constant 1 : index
    %c0_205 = arith.constant 0 : index
    %155 = vector.load %arg13[%c1_203, %c1_204, %c0_205] : memref<10x10x4xf32, #tpu.memory_space<vmem>>, vector<8x8x4xf32>
    %156 = vector.shape_cast %155 : vector<8x8x4xf32> to vector<64x4xf32>
    %c1_206 = arith.constant 1 : index
    %c1_207 = arith.constant 1 : index
    %c0_208 = arith.constant 0 : index
    %c0_209 = arith.constant 0 : index
    %157 = vector.load %arg6[%c1_206, %c1_207, %c0_208, %c0_209] : memref<3x3x4x6xf32, #tpu.memory_space<vmem>>, vector<1x1x4x6xf32>
    %158 = vector.shape_cast %157 : vector<1x1x4x6xf32> to vector<4x6xf32>
    %cst_210 = arith.constant dense<0.000000e+00> : vector<64x6xf32>
    %159 = tpu.matmul %156, %158, %cst_210 {dimension_numbers = #tpu.dot_dimension_numbers<[1], [0], [0], [1], [0, 0, 1, 1], [], []>} : vector<64x4xf32>, vector<4x6xf32>, vector<64x6xf32> -> vector<64x6xf32>
    %160 = arith.addf %154, %159 : vector<64x6xf32>
    %c1_211 = arith.constant 1 : index
    %c2_212 = arith.constant 2 : index
    %c0_213 = arith.constant 0 : index
    %161 = vector.load %arg13[%c1_211, %c2_212, %c0_213] : memref<10x10x4xf32, #tpu.memory_space<vmem>>, vector<8x8x4xf32>
    %162 = vector.shape_cast %161 : vector<8x8x4xf32> to vector<64x4xf32>
    %c1_214 = arith.constant 1 : index
    %c2_215 = arith.constant 2 : index
    %c0_216 = arith.constant 0 : index
    %c0_217 = arith.constant 0 : index
    %163 = vector.load %arg6[%c1_214, %c2_215, %c0_216, %c0_217] : memref<3x3x4x6xf32, #tpu.memory_space<vmem>>, vector<1x1x4x6xf32>
    %164 = vector.shape_cast %163 : vector<1x1x4x6xf32> to vector<4x6xf32>
    %cst_218 = arith.constant dense<0.000000e+00> : vector<64x6xf32>
    %165 = tpu.matmul %162, %164, %cst_218 {dimension_numbers = #tpu.dot_dimension_numbers<[1], [0], [0], [1], [0, 0, 1, 1], [], []>} : vector<64x4xf32>, vector<4x6xf32>, vector<64x6xf32> -> vector<64x6xf32>
    %166 = arith.addf %160, %165 : vector<64x6xf32>
    %c2_219 = arith.constant 2 : index
    %c0_220 = arith.constant 0 : index
    %c0_221 = arith.constant 0 : index
    %167 = vector.load %arg13[%c2_219, %c0_220, %c0_221] : memref<10x10x4xf32, #tpu.memory_space<vmem>>, vector<8x8x4xf32>
    %168 = vector.shape_cast %167 : vector<8x8x4xf32> to vector<64x4xf32>
    %c2_222 = arith.constant 2 : index
    %c0_223 = arith.constant 0 : index
    %c0_224 = arith.constant 0 : index
    %c0_225 = arith.constant 0 : index
    %169 = vector.load %arg6[%c2_222, %c0_223, %c0_224, %c0_225] : memref<3x3x4x6xf32, #tpu.memory_space<vmem>>, vector<1x1x4x6xf32>
    %170 = vector.shape_cast %169 : vector<1x1x4x6xf32> to vector<4x6xf32>
    %cst_226 = arith.constant dense<0.000000e+00> : vector<64x6xf32>
    %171 = tpu.matmul %168, %170, %cst_226 {dimension_numbers = #tpu.dot_dimension_numbers<[1], [0], [0], [1], [0, 0, 1, 1], [], []>} : vector<64x4xf32>, vector<4x6xf32>, vector<64x6xf32> -> vector<64x6xf32>
    %172 = arith.addf %166, %171 : vector<64x6xf32>
    %c2_227 = arith.constant 2 : index
    %c1_228 = arith.constant 1 : index
    %c0_229 = arith.constant 0 : index
    %173 = vector.load %arg13[%c2_227, %c1_228, %c0_229] : memref<10x10x4xf32, #tpu.memory_space<vmem>>, vector<8x8x4xf32>
    %174 = vector.shape_cast %173 : vector<8x8x4xf32> to vector<64x4xf32>
    %c2_230 = arith.constant 2 : index
    %c1_231 = arith.constant 1 : index
    %c0_232 = arith.constant 0 : index
    %c0_233 = arith.constant 0 : index
    %175 = vector.load %arg6[%c2_230, %c1_231, %c0_232, %c0_233] : memref<3x3x4x6xf32, #tpu.memory_space<vmem>>, vector<1x1x4x6xf32>
    %176 = vector.shape_cast %175 : vector<1x1x4x6xf32> to vector<4x6xf32>
    %cst_234 = arith.constant dense<0.000000e+00> : vector<64x6xf32>
    %177 = tpu.matmul %174, %176, %cst_234 {dimension_numbers = #tpu.dot_dimension_numbers<[1], [0], [0], [1], [0, 0, 1, 1], [], []>} : vector<64x4xf32>, vector<4x6xf32>, vector<64x6xf32> -> vector<64x6xf32>
    %178 = arith.addf %172, %177 : vector<64x6xf32>
    %c2_235 = arith.constant 2 : index
    %c2_236 = arith.constant 2 : index
    %c0_237 = arith.constant 0 : index
    %179 = vector.load %arg13[%c2_235, %c2_236, %c0_237] : memref<10x10x4xf32, #tpu.memory_space<vmem>>, vector<8x8x4xf32>
    %180 = vector.shape_cast %179 : vector<8x8x4xf32> to vector<64x4xf32>
    %c2_238 = arith.constant 2 : index
    %c2_239 = arith.constant 2 : index
    %c0_240 = arith.constant 0 : index
    %c0_241 = arith.constant 0 : index
    %181 = vector.load %arg6[%c2_238, %c2_239, %c0_240, %c0_241] : memref<3x3x4x6xf32, #tpu.memory_space<vmem>>, vector<1x1x4x6xf32>
    %182 = vector.shape_cast %181 : vector<1x1x4x6xf32> to vector<4x6xf32>
    %cst_242 = arith.constant dense<0.000000e+00> : vector<64x6xf32>
    %183 = tpu.matmul %180, %182, %cst_242 {dimension_numbers = #tpu.dot_dimension_numbers<[1], [0], [0], [1], [0, 0, 1, 1], [], []>} : vector<64x4xf32>, vector<4x6xf32>, vector<64x6xf32> -> vector<64x6xf32>
    %184 = arith.addf %178, %183 : vector<64x6xf32>
    %c0_243 = arith.constant 0 : index
    %c0_244 = arith.constant 0 : index
    %185 = vector.load %arg7[%c0_243, %c0_244] : memref<1x6xf32, #tpu.memory_space<vmem>>, vector<1x6xf32>
    %186 = vector.broadcast %185 : vector<1x6xf32> to vector<64x6xf32>
    %187 = arith.addf %184, %186 : vector<64x6xf32>
    %cst_245 = arith.constant 0.000000e+00 : f32
    %188 = vector.broadcast %cst_245 : f32 to vector<10x10x6xf32>
    %c0_246 = arith.constant 0 : index
    %c0_247 = arith.constant 0 : index
    %c0_248 = arith.constant 0 : index
    %189 = vector.load %arg14[%c0_246, %c0_247, %c0_248] : memref<10x10x6xf32, #tpu.memory_space<vmem>>, vector<10x10x6xf32>
    tpu.vector_store %arg14[%c0_246, %c0_247, %c0_248], %188 {strides = array<i32>} : memref<10x10x6xf32, #tpu.memory_space<vmem>>, vector<10x10x6xf32>,
    %190 = vector.shape_cast %187 : vector<64x6xf32> to vector<8x8x6xf32>
    %c1_249 = arith.constant 1 : index
    %c1_250 = arith.constant 1 : index
    %c0_251 = arith.constant 0 : index
    %191 = vector.load %arg14[%c1_249, %c1_250, %c0_251] : memref<10x10x6xf32, #tpu.memory_space<vmem>>, vector<8x8x6xf32>
    tpu.vector_store %arg14[%c1_249, %c1_250, %c0_251], %190 {strides = array<i32>} : memref<10x10x6xf32, #tpu.memory_space<vmem>>, vector<8x8x6xf32>,
    %cst_252 = arith.constant 0.000000e+00 : f32
    %192 = vector.broadcast %cst_252 : f32 to vector<64x12xf32>
    %c0_253 = arith.constant 0 : index
    %c0_254 = arith.constant 0 : index
    %c0_255 = arith.constant 0 : index
    %193 = vector.load %arg14[%c0_253, %c0_254, %c0_255] : memref<10x10x6xf32, #tpu.memory_space<vmem>>, vector<8x8x6xf32>
    %194 = vector.shape_cast %193 : vector<8x8x6xf32> to vector<64x6xf32>
    %c0_256 = arith.constant 0 : index
    %c0_257 = arith.constant 0 : index
    %c0_258 = arith.constant 0 : index
    %c0_259 = arith.constant 0 : index
    %195 = vector.load %arg8[%c0_256, %c0_257, %c0_258, %c0_259] : memref<3x3x6x12xf32, #tpu.memory_space<vmem>>, vector<1x1x6x12xf32>
    %196 = vector.shape_cast %195 : vector<1x1x6x12xf32> to vector<6x12xf32>
    %cst_260 = arith.constant dense<0.000000e+00> : vector<64x12xf32>
    %197 = tpu.matmul %194, %196, %cst_260 {dimension_numbers = #tpu.dot_dimension_numbers<[1], [0], [0], [1], [0, 0, 1, 1], [], []>} : vector<64x6xf32>, vector<6x12xf32>, vector<64x12xf32> -> vector<64x12xf32>
    %198 = arith.addf %192, %197 : vector<64x12xf32>
    %c0_261 = arith.constant 0 : index
    %c1_262 = arith.constant 1 : index
    %c0_263 = arith.constant 0 : index
    %199 = vector.load %arg14[%c0_261, %c1_262, %c0_263] : memref<10x10x6xf32, #tpu.memory_space<vmem>>, vector<8x8x6xf32>
    %200 = vector.shape_cast %199 : vector<8x8x6xf32> to vector<64x6xf32>
    %c0_264 = arith.constant 0 : index
    %c1_265 = arith.constant 1 : index
    %c0_266 = arith.constant 0 : index
    %c0_267 = arith.constant 0 : index
    %201 = vector.load %arg8[%c0_264, %c1_265, %c0_266, %c0_267] : memref<3x3x6x12xf32, #tpu.memory_space<vmem>>, vector<1x1x6x12xf32>
    %202 = vector.shape_cast %201 : vector<1x1x6x12xf32> to vector<6x12xf32>
    %cst_268 = arith.constant dense<0.000000e+00> : vector<64x12xf32>
    %203 = tpu.matmul %200, %202, %cst_268 {dimension_numbers = #tpu.dot_dimension_numbers<[1], [0], [0], [1], [0, 0, 1, 1], [], []>} : vector<64x6xf32>, vector<6x12xf32>, vector<64x12xf32> -> vector<64x12xf32>
    %204 = arith.addf %198, %203 : vector<64x12xf32>
    %c0_269 = arith.constant 0 : index
    %c2_270 = arith.constant 2 : index
    %c0_271 = arith.constant 0 : index
    %205 = vector.load %arg14[%c0_269, %c2_270, %c0_271] : memref<10x10x6xf32, #tpu.memory_space<vmem>>, vector<8x8x6xf32>
    %206 = vector.shape_cast %205 : vector<8x8x6xf32> to vector<64x6xf32>
    %c0_272 = arith.constant 0 : index
    %c2_273 = arith.constant 2 : index
    %c0_274 = arith.constant 0 : index
    %c0_275 = arith.constant 0 : index
    %207 = vector.load %arg8[%c0_272, %c2_273, %c0_274, %c0_275] : memref<3x3x6x12xf32, #tpu.memory_space<vmem>>, vector<1x1x6x12xf32>
    %208 = vector.shape_cast %207 : vector<1x1x6x12xf32> to vector<6x12xf32>
    %cst_276 = arith.constant dense<0.000000e+00> : vector<64x12xf32>
    %209 = tpu.matmul %206, %208, %cst_276 {dimension_numbers = #tpu.dot_dimension_numbers<[1], [0], [0], [1], [0, 0, 1, 1], [], []>} : vector<64x6xf32>, vector<6x12xf32>, vector<64x12xf32> -> vector<64x12xf32>
    %210 = arith.addf %204, %209 : vector<64x12xf32>
    %c1_277 = arith.constant 1 : index
    %c0_278 = arith.constant 0 : index
    %c0_279 = arith.constant 0 : index
    %211 = vector.load %arg14[%c1_277, %c0_278, %c0_279] : memref<10x10x6xf32, #tpu.memory_space<vmem>>, vector<8x8x6xf32>
    %212 = vector.shape_cast %211 : vector<8x8x6xf32> to vector<64x6xf32>
    %c1_280 = arith.constant 1 : index
    %c0_281 = arith.constant 0 : index
    %c0_282 = arith.constant 0 : index
    %c0_283 = arith.constant 0 : index
    %213 = vector.load %arg8[%c1_280, %c0_281, %c0_282, %c0_283] : memref<3x3x6x12xf32, #tpu.memory_space<vmem>>, vector<1x1x6x12xf32>
    %214 = vector.shape_cast %213 : vector<1x1x6x12xf32> to vector<6x12xf32>
    %cst_284 = arith.constant dense<0.000000e+00> : vector<64x12xf32>
    %215 = tpu.matmul %212, %214, %cst_284 {dimension_numbers = #tpu.dot_dimension_numbers<[1], [0], [0], [1], [0, 0, 1, 1], [], []>} : vector<64x6xf32>, vector<6x12xf32>, vector<64x12xf32> -> vector<64x12xf32>
    %216 = arith.addf %210, %215 : vector<64x12xf32>
    %c1_285 = arith.constant 1 : index
    %c1_286 = arith.constant 1 : index
    %c0_287 = arith.constant 0 : index
    %217 = vector.load %arg14[%c1_285, %c1_286, %c0_287] : memref<10x10x6xf32, #tpu.memory_space<vmem>>, vector<8x8x6xf32>
    %218 = vector.shape_cast %217 : vector<8x8x6xf32> to vector<64x6xf32>
    %c1_288 = arith.constant 1 : index
    %c1_289 = arith.constant 1 : index
    %c0_290 = arith.constant 0 : index
    %c0_291 = arith.constant 0 : index
    %219 = vector.load %arg8[%c1_288, %c1_289, %c0_290, %c0_291] : memref<3x3x6x12xf32, #tpu.memory_space<vmem>>, vector<1x1x6x12xf32>
    %220 = vector.shape_cast %219 : vector<1x1x6x12xf32> to vector<6x12xf32>
    %cst_292 = arith.constant dense<0.000000e+00> : vector<64x12xf32>
    %221 = tpu.matmul %218, %220, %cst_292 {dimension_numbers = #tpu.dot_dimension_numbers<[1], [0], [0], [1], [0, 0, 1, 1], [], []>} : vector<64x6xf32>, vector<6x12xf32>, vector<64x12xf32> -> vector<64x12xf32>
    %222 = arith.addf %216, %221 : vector<64x12xf32>
    %c1_293 = arith.constant 1 : index
    %c2_294 = arith.constant 2 : index
    %c0_295 = arith.constant 0 : index
    %223 = vector.load %arg14[%c1_293, %c2_294, %c0_295] : memref<10x10x6xf32, #tpu.memory_space<vmem>>, vector<8x8x6xf32>
    %224 = vector.shape_cast %223 : vector<8x8x6xf32> to vector<64x6xf32>
    %c1_296 = arith.constant 1 : index
    %c2_297 = arith.constant 2 : index
    %c0_298 = arith.constant 0 : index
    %c0_299 = arith.constant 0 : index
    %225 = vector.load %arg8[%c1_296, %c2_297, %c0_298, %c0_299] : memref<3x3x6x12xf32, #tpu.memory_space<vmem>>, vector<1x1x6x12xf32>
    %226 = vector.shape_cast %225 : vector<1x1x6x12xf32> to vector<6x12xf32>
    %cst_300 = arith.constant dense<0.000000e+00> : vector<64x12xf32>
    %227 = tpu.matmul %224, %226, %cst_300 {dimension_numbers = #tpu.dot_dimension_numbers<[1], [0], [0], [1], [0, 0, 1, 1], [], []>} : vector<64x6xf32>, vector<6x12xf32>, vector<64x12xf32> -> vector<64x12xf32>
    %228 = arith.addf %222, %227 : vector<64x12xf32>
    %c2_301 = arith.constant 2 : index
    %c0_302 = arith.constant 0 : index
    %c0_303 = arith.constant 0 : index
    %229 = vector.load %arg14[%c2_301, %c0_302, %c0_303] : memref<10x10x6xf32, #tpu.memory_space<vmem>>, vector<8x8x6xf32>
    %230 = vector.shape_cast %229 : vector<8x8x6xf32> to vector<64x6xf32>
    %c2_304 = arith.constant 2 : index
    %c0_305 = arith.constant 0 : index
    %c0_306 = arith.constant 0 : index
    %c0_307 = arith.constant 0 : index
    %231 = vector.load %arg8[%c2_304, %c0_305, %c0_306, %c0_307] : memref<3x3x6x12xf32, #tpu.memory_space<vmem>>, vector<1x1x6x12xf32>
    %232 = vector.shape_cast %231 : vector<1x1x6x12xf32> to vector<6x12xf32>
    %cst_308 = arith.constant dense<0.000000e+00> : vector<64x12xf32>
    %233 = tpu.matmul %230, %232, %cst_308 {dimension_numbers = #tpu.dot_dimension_numbers<[1], [0], [0], [1], [0, 0, 1, 1], [], []>} : vector<64x6xf32>, vector<6x12xf32>, vector<64x12xf32> -> vector<64x12xf32>
    %234 = arith.addf %228, %233 : vector<64x12xf32>
    %c2_309 = arith.constant 2 : index
    %c1_310 = arith.constant 1 : index
    %c0_311 = arith.constant 0 : index
    %235 = vector.load %arg14[%c2_309, %c1_310, %c0_311] : memref<10x10x6xf32, #tpu.memory_space<vmem>>, vector<8x8x6xf32>
    %236 = vector.shape_cast %235 : vector<8x8x6xf32> to vector<64x6xf32>
    %c2_312 = arith.constant 2 : index
    %c1_313 = arith.constant 1 : index
    %c0_314 = arith.constant 0 : index
    %c0_315 = arith.constant 0 : index
    %237 = vector.load %arg8[%c2_312, %c1_313, %c0_314, %c0_315] : memref<3x3x6x12xf32, #tpu.memory_space<vmem>>, vector<1x1x6x12xf32>
    %238 = vector.shape_cast %237 : vector<1x1x6x12xf32> to vector<6x12xf32>
    %cst_316 = arith.constant dense<0.000000e+00> : vector<64x12xf32>
    %239 = tpu.matmul %236, %238, %cst_316 {dimension_numbers = #tpu.dot_dimension_numbers<[1], [0], [0], [1], [0, 0, 1, 1], [], []>} : vector<64x6xf32>, vector<6x12xf32>, vector<64x12xf32> -> vector<64x12xf32>
    %240 = arith.addf %234, %239 : vector<64x12xf32>
    %c2_317 = arith.constant 2 : index
    %c2_318 = arith.constant 2 : index
    %c0_319 = arith.constant 0 : index
    %241 = vector.load %arg14[%c2_317, %c2_318, %c0_319] : memref<10x10x6xf32, #tpu.memory_space<vmem>>, vector<8x8x6xf32>
    %242 = vector.shape_cast %241 : vector<8x8x6xf32> to vector<64x6xf32>
    %c2_320 = arith.constant 2 : index
    %c2_321 = arith.constant 2 : index
    %c0_322 = arith.constant 0 : index
    %c0_323 = arith.constant 0 : index
    %243 = vector.load %arg8[%c2_320, %c2_321, %c0_322, %c0_323] : memref<3x3x6x12xf32, #tpu.memory_space<vmem>>, vector<1x1x6x12xf32>
    %244 = vector.shape_cast %243 : vector<1x1x6x12xf32> to vector<6x12xf32>
    %cst_324 = arith.constant dense<0.000000e+00> : vector<64x12xf32>
    %245 = tpu.matmul %242, %244, %cst_324 {dimension_numbers = #tpu.dot_dimension_numbers<[1], [0], [0], [1], [0, 0, 1, 1], [], []>} : vector<64x6xf32>, vector<6x12xf32>, vector<64x12xf32> -> vector<64x12xf32>
    %246 = arith.addf %240, %245 : vector<64x12xf32>
    %c0_325 = arith.constant 0 : index
    %c0_326 = arith.constant 0 : index
    %247 = vector.load %arg9[%c0_325, %c0_326] : memref<1x12xf32, #tpu.memory_space<vmem>>, vector<1x12xf32>
    %248 = vector.broadcast %247 : vector<1x12xf32> to vector<64x12xf32>
    %249 = arith.addf %246, %248 : vector<64x12xf32>
    %c0_327 = arith.constant 0 : index
    %c0_328 = arith.constant 0 : index
    %c0_329 = arith.constant 0 : index
    %250 = vector.load %arg10[%c0_327, %c0_328, %c0_329] : memref<1x64x12xf32, #tpu.memory_space<vmem>>, vector<1x64x12xf32>
    %251 = vector.shape_cast %250 : vector<1x64x12xf32> to vector<64x12xf32>
    %252 = vector.shape_cast %249 : vector<64x12xf32> to vector<1x64x12xf32>
    tpu.vector_store %arg10[%c0_327, %c0_328, %c0_329], %252 {strides = array<i32>} : memref<1x64x12xf32, #tpu.memory_space<vmem>>, vector<1x64x12xf32>,
    return
  }
  func.func @transform_0(%arg0: i32) -> (i32, i32, i32) {
    %c0_i32 = arith.constant 0 : i32
    %c0_i32_0 = arith.constant 0 : i32
    %c0_i32_1 = arith.constant 0 : i32
    return %arg0, %c0_i32, %c0_i32_0 : i32, i32, i32
  }
  func.func @transform_1(%arg0: i32) -> (i32, i32, i32, i32) {
    %c0_i32 = arith.constant 0 : i32
    %c0_i32_0 = arith.constant 0 : i32
    %c0_i32_1 = arith.constant 0 : i32
    %c0_i32_2 = arith.constant 0 : i32
    %c0_i32_3 = arith.constant 0 : i32
    return %c0_i32, %c0_i32_0, %c0_i32_1, %c0_i32_2 : i32, i32, i32, i32
  }
  func.func @transform_2(%arg0: i32) -> (i32, i32) {
    %c0_i32 = arith.constant 0 : i32
    %c0_i32_0 = arith.constant 0 : i32
    %c0_i32_1 = arith.constant 0 : i32
    return %c0_i32, %c0_i32_0 : i32, i32
  }
  func.func @transform_3(%arg0: i32) -> (i32, i32, i32, i32) {
    %c0_i32 = arith.constant 0 : i32
    %c0_i32_0 = arith.constant 0 : i32
    %c0_i32_1 = arith.constant 0 : i32
    %c0_i32_2 = arith.constant 0 : i32
    %c0_i32_3 = arith.constant 0 : i32
    return %c0_i32, %c0_i32_0, %c0_i32_1, %c0_i32_2 : i32, i32, i32, i32
  }
  func.func @transform_4(%arg0: i32) -> (i32, i32) {
    %c0_i32 = arith.constant 0 : i32
    %c0_i32_0 = arith.constant 0 : i32
    %c0_i32_1 = arith.constant 0 : i32
    return %c0_i32, %c0_i32_0 : i32, i32
  }
  func.func @transform_5(%arg0: i32) -> (i32, i32, i32, i32) {
    %c0_i32 = arith.constant 0 : i32
    %c0_i32_0 = arith.constant 0 : i32
    %c0_i32_1 = arith.constant 0 : i32
    %c0_i32_2 = arith.constant 0 : i32
    %c0_i32_3 = arith.constant 0 : i32
    return %c0_i32, %c0_i32_0, %c0_i32_1, %c0_i32_2 : i32, i32, i32, i32
  }
  func.func @transform_6(%arg0: i32) -> (i32, i32) {
    %c0_i32 = arith.constant 0 : i32
    %c0_i32_0 = arith.constant 0 : i32
    %c0_i32_1 = arith.constant 0 : i32
    return %c0_i32, %c0_i32_0 : i32, i32
  }
  func.func @transform_7(%arg0: i32) -> (i32, i32, i32, i32) {
    %c0_i32 = arith.constant 0 : i32
    %c0_i32_0 = arith.constant 0 : i32
    %c0_i32_1 = arith.constant 0 : i32
    %c0_i32_2 = arith.constant 0 : i32
    %c0_i32_3 = arith.constant 0 : i32
    return %c0_i32, %c0_i32_0, %c0_i32_1, %c0_i32_2 : i32, i32, i32, i32
  }
  func.func @transform_8(%arg0: i32) -> (i32, i32) {
    %c0_i32 = arith.constant 0 : i32
    %c0_i32_0 = arith.constant 0 : i32
    %c0_i32_1 = arith.constant 0 : i32
    return %c0_i32, %c0_i32_0 : i32, i32
  }
  func.func @transform_9(%arg0: i32) -> (i32, i32, i32) {
    %c0_i32 = arith.constant 0 : i32
    %c0_i32_0 = arith.constant 0 : i32
    %c0_i32_1 = arith.constant 0 : i32
    return %arg0, %c0_i32, %c0_i32_0 : i32, i32, i32
  }
}

</mosaic_0001>

<bundles_post_ra>
// kernel: _lambda_.1
= control target key start
LH: loop header
LB: loop body
LE: loop exit
PB: predicated region body
PF: predicated region fallthrough
CT: control target
= control target key end

     0   :  { %s7639_s30 = smov 0   ;;  %s8815_s0 = inlined_call_operand.vmem [shape: f32[2,64,12], index: 0, kind: input, shape index: {}]   ;;  %s8816_s1 = inlined_call_operand.vmem [shape: f32[3,3,12,24], index: 1, kind: input, shape index: {}]   ;;  %s8817_s2 = inlined_call_operand.vmem [shape: f32[1,24], index: 2, kind: input, shape index: {}]   ;;  %s8818_s3 = inlined_call_operand.vmem [shape: f32[3,3,24,4], index: 3, kind: input, shape index: {}]   ;;  %s8819_s4 = inlined_call_operand.vmem [shape: f32[1,4], index: 4, kind: input, shape index: {}]   ;;  %s8820_s5 = inlined_call_operand.vmem [shape: f32[3,3,4,6], index: 5, kind: input, shape index: {}]   ;;  %s8821_s6 = inlined_call_operand.vmem [shape: f32[1,6], index: 6, kind: input, shape index: {}]   ;;  %s8822_s7 = inlined_call_operand.vmem [shape: f32[3,3,6,12], index: 7, kind: input, shape index: {}]   ;;  %s8823_s8 = inlined_call_operand.vmem [shape: f32[1,12], index: 8, kind: input, shape index: {}]   ;;  %s8824_s9 = inlined_call_operand.vmem [shape: f32[2,64,12], index: 9, kind: output, shape index: {}]  }
   0x1 LB: > { %s5926_s10 = sadd.s32 4294967295, %s7585_s30   ;;  %p5930_p0 = scmp.ge.s32.totalorder %s7585_s30, 1  ;;  %s7585_s30 = sphi %s7639_s30, %s19_s30  }
   0x2   : > { %p287_p1 = scmp.lt.s32.totalorder %s7585_s30, 3 }
   0x4   : > { %p288_p2 = pnand %p5930_p0, %p287_p1 }
   0x5   : > { %v5935_v0 = vld [vmem:[%s8816_s1 + $0x10] sm:$0xff] (!%p288_p2)  ;;  %v5936_v1 = vld [vmem:[%s8816_s1 + $0x18] sm:$0xf] (!%p288_p2)  ;;  %vm417_vm0 = vcmask (!%p288_p2), 1043456   ;;  %vm341_vm1 = vcmask (!%p288_p2), 97280   ;;  %vm7587_vm2 = vmmov (!%p288_p2), 1  }
   0x6   : > { %291 = sbr.rel (%p288_p2) target bundleno = 1435 (0x59b), region = 56  ;;  %v7223_v2 = vpack.c.bf16 (!%p288_p2), %v5936_v1, %v5935_v0  ;;  %vm7654_vm3 = vmpackc.low (!%p288_p2), %vm417_vm0, %vm7587_vm2  ;;  %vm343_vm4 = vcmask (!%p288_p2), 91136   ;;  %v380_v4 = vld [vmem:[%s8816_s1] sm:$0xff] (!%p288_p2)  ;;  %v381_v5 = vld [vmem:[%s8816_s1 + $0x8] sm:$0xf] (!%p288_p2)  ;;  %p7666_p3 = scmp.lt.s32.totalorder (!%p288_p2), %s5926_s10, 1 }
   0x7   : > { %v7588_v6 = vmov (!%p288_p2), 0.0   ;;  %v7229_v7 = vpack.c.bf16 (!%p288_p2), %v381_v5, %v380_v4  ;;  %v5955_v17 = vld [vmem:[%s8816_s1 + $0x20] sm:$0xff] (!%p288_p2)  ;;  %v5956_v18 = vld [vmem:[%s8816_s1 + $0x28] sm:$0xf] (!%p288_p2)  ;;  %v5966_v28 = vld [vmem:[%s8816_s1 + $0x30] sm:$0xff] (!%p288_p2)  ;;  %vm1731_vm5 = vcmask (!%p288_p2), 195584  }
   0x8   : > { %342 = vst.msk [vmem:[#allocation2] sm:$0xff] (!%p288_p2), %vm341_vm1, %v7588_v6  ;;  %345 = vst.msk [vmem:[#allocation2 + $0x10] sm:$0xff] (!%p288_p2), %vm341_vm1, %v7588_v6  ;;  %7225 = vmatprep.subr.msk.bf16.mxu0 (!%p288_p2), %vm7654_vm3, %v7223_v2  ;;  %v7235_v19 = vpack.c.bf16 (!%p288_p2), %v5956_v18, %v5955_v17  ;;  %v5967_v29 = vld [vmem:[%s8816_s1 + $0x38] sm:$0xf] (!%p288_p2)  ;;  %v5977_v39 = vld [vmem:[%s8816_s1 + $0x40] sm:$0xff] (!%p288_p2)  ;;  %vm1733_vm6 = vcmask (!%p288_p2), 189440  }
   0x9   : > { %344 = vst.msk [vmem:[#allocation2 + $0x8] sm:$0x3] (!%p288_p2), %vm343_vm4, %v7588_v6  ;;  %346 = vst.msk [vmem:[#allocation2 + $0x18] sm:$0x3] (!%p288_p2), %vm343_vm4, %v7588_v6  ;;  %7228 = vmatpush3.bf16.msk.msra.mxu0 (!%p288_p2), %vm7654_vm3, %v7223_v2  ;;  %v7241_v32 = vpack.c.bf16 (!%p288_p2), %v5967_v29, %v5966_v28  ;;  %v5978_v40 = vld [vmem:[%s8816_s1 + $0x48] sm:$0xf] (!%p288_p2) }
   0xa   : > { %347 = vst.msk [vmem:[#allocation2 + $0x20] sm:$0xff] (!%p288_p2), %vm341_vm1, %v7588_v6  ;;  %349 = vst.msk [vmem:[#allocation2 + $0x30] sm:$0xff] (!%p288_p2), %vm341_vm1, %v7588_v6  ;;  %7231 = vmatprep.subr.msk.bf16.mxu0 (!%p288_p2), %vm7654_vm3, %v7229_v7  ;;  %v7247_v43 = vpack.c.bf16 (!%p288_p2), %v5978_v40, %v5977_v39  ;;  %v5988_v49 = vld [vmem:[%s8816_s1 + $0x50] sm:$0xff] (!%p288_p2)  ;;  %v5989_v50 = vld [vmem:[%s8816_s1 + $0x58] sm:$0xf] (!%p288_p2)  ;;  %vm3102_vm7 = vcmask (!%p288_p2), 31744  }
   0xb   : > { %348 = vst.msk [vmem:[#allocation2 + $0x28] sm:$0x3] (!%p288_p2), %vm343_vm4, %v7588_v6  ;;  %350 = vst.msk [vmem:[#allocation2 + $0x38] sm:$0x3] (!%p288_p2), %vm343_vm4, %v7588_v6  ;;  %v7253_v51 = vpack.c.bf16 (!%p288_p2), %v5989_v50, %v5988_v49  ;;  %v5999_v53 = vld [vmem:[%s8816_s1 + $0x60] sm:$0xff] (!%p288_p2)  ;;  %v6010_v57 = vld [vmem:[%s8816_s1 + $0x70] sm:$0xff] (!%p288_p2) }
   0xc   : > { %351 = vst.msk [vmem:[#allocation2 + $0x40] sm:$0xff] (!%p288_p2), %vm341_vm1, %v7588_v6  ;;  %353 = vst.msk [vmem:[#allocation2 + $0x50] sm:$0xff] (!%p288_p2), %vm341_vm1, %v7588_v6  ;;  %v6000_v54 = vld [vmem:[%s8816_s1 + $0x68] sm:$0xf] (!%p288_p2)  ;;  %v6011_v58 = vld [vmem:[%s8816_s1 + $0x78] sm:$0xf] (!%p288_p2) }
   0xd   : > { %352 = vst.msk [vmem:[#allocation2 + $0x48] sm:$0x3] %vm343_vm4, %v7588_v6  ;;  %354 = vst.msk [vmem:[#allocation2 + $0x58] sm:$0x3] %vm343_vm4, %v7588_v6  ;;  %s8829_s10 = smov (!%p7666_p3, %s5926_s10), 1  ;;  %v7259_v55 = vpack.c.bf16 %v6000_v54, %v5999_v53  ;;  %v7265_v59 = vpack.c.bf16 %v6011_v58, %v6010_v57  ;;  %v6021_v61 = vld [vmem:[%s8816_s1 + $0x80] sm:$0xff] }
   0xe   : > { %355 = vst.msk [vmem:[#allocation2 + $0x60] sm:$0xff] %vm341_vm1, %v7588_v6  ;;  %357 = vst.msk [vmem:[#allocation2 + $0x70] sm:$0xff] %vm341_vm1, %v7588_v6  ;;  %s6312_s20 = sshll.u32 %s8829_s10, 6  ;;  %v6022_v62 = vld [vmem:[%s8816_s1 + $0x88] sm:$0xf]  ;;  %v6033_v3 = vld [vmem:[%s8818_s3 + $0x18] sm:$0xff] }
   0xf   : > { %356 = vst.msk [vmem:[#allocation2 + $0x68] sm:$0x3] %vm343_vm4, %v7588_v6  ;;  %358 = vst.msk [vmem:[#allocation2 + $0x78] sm:$0x3] %vm343_vm4, %v7588_v6  ;;  %s327_s23 = scalar_lea.vmem %s8815_s0, %s6312_s20  ;;  %v372_v27 = vld [vmem:[#allocation2] sm:$0xff]  ;;  %v7271_v63 = vpack.c.bf16 %v6022_v62, %v6021_v61  ;;  %v6053_v28 = vld [vmem:[%s8818_s3 + $0x38] sm:$0xff]  ;;  %s332_s26 = scalar_lea.vmem %s8824_s9, %s6312_s20 }
  0x10   : > { %359 = vst.msk [vmem:[#allocation2 + $0x80] sm:$0xff] %vm341_vm1, %v7588_v6  ;;  %361 = vst.msk [vmem:[#allocation2 + $0x90] sm:$0xff] %vm341_vm1, %v7588_v6  ;;  %v333_v8 = vld [vmem:[%s327_s23] sm:$0xff]  ;;  %v334_v9 = vld [vmem:[%s327_s23 + $0x8] sm:$0xff]  ;;  %vm3104_vm8 = vcmask 25600   ;;  %vm4556_vm9 = vcmask 1045504  }
  0x11   : > { %360 = vst.msk [vmem:[#allocation2 + $0x88] sm:$0x3] %vm343_vm4, %v7588_v6  ;;  %362 = vst.msk [vmem:[#allocation2 + $0x98] sm:$0x3] %vm343_vm4, %v7588_v6  ;;  %v335_v10 = vld [vmem:[%s327_s23 + $0x10] sm:$0xff]  ;;  %v336_v11 = vld [vmem:[%s327_s23 + $0x18] sm:$0xff] }
  0x12   : > { %364 = vst.msk [vmem:[#allocation2 + $0x11] sm:$0xff] %vm341_vm1, %v333_v8  ;;  %365 = vst.msk [vmem:[#allocation2 + $0x21] sm:$0xff] %vm341_vm1, %v334_v9  ;;  %v337_v12 = vld [vmem:[%s327_s23 + $0x20] sm:$0xff]  ;;  %v338_v13 = vld [vmem:[%s327_s23 + $0x28] sm:$0xff]  ;;  %vm4482_vm10 = vcmask 48128   ;;  %vm4484_vm11 = vcmask 41984  }
  0x13   : > { %366 = vst.msk [vmem:[#allocation2 + $0x31] sm:$0xff] %vm341_vm1, %v335_v10  ;;  %v382_v14 = vld [vmem:[#allocation2 + $0x1] sm:$0xff]  ;;  %367 = vst.msk [vmem:[#allocation2 + $0x41] sm:$0xff] %vm341_vm1, %v336_v11  ;;  %v339_v15 = vld [vmem:[%s327_s23 + $0x30] sm:$0xff] }
  0x14   : > { %368 = vst.msk [vmem:[#allocation2 + $0x51] sm:$0xff] %vm341_vm1, %v337_v12  ;;  %369 = vst.msk [vmem:[#allocation2 + $0x61] sm:$0xff] %vm341_vm1, %v338_v13  ;;  %6669 = vmatprep.mubr.msk.f32.mxu0 %vm341_vm1, %v382_v14  ;;  %v340_v16 = vld [vmem:[%s327_s23 + $0x38] sm:$0xff]  ;;  %v658_v38 = vld [vmem:[#allocation2 + $0x2] sm:$0xff] }
  0x15   : > { %370 = vst.msk [vmem:[#allocation2 + $0x71] sm:$0xff] %vm341_vm1, %v339_v15  ;;  %371 = vst.msk [vmem:[#allocation2 + $0x81] sm:$0xff] %vm341_vm1, %v340_v16  ;;  %v6034_v4 = vld [vmem:[%s8818_s3 + $0x20] sm:$0xff]  ;;  %v1771_v10 = vld [vmem:[%s8818_s3 + $0x8] sm:$0xff] }
  0x16   : > { %1737 = vst.msk [vmem:[#allocation3 + $0x20] sm:$0xff] %vm1731_vm5, %v7588_v6  ;;  %1732 = vst.msk [vmem:[#allocation3] sm:$0xff] %vm1731_vm5, %v7588_v6  ;;  %v7277_v5 = vpack.c.bf16 %v6034_v4, %v6033_v3  ;;  %v1770_v9 = vld [vmem:[%s8818_s3] sm:$0xff]  ;;  %v6065_v54 = vld [vmem:[%s8818_s3 + $0x58] sm:$0xff] }
  0x17   : > { %v1270_v0 = vld [vmem:[#allocation2 + $0x90] sm:$0xff]  ;;  %1738 = vst.msk [vmem:[#allocation3 + $0x28] sm:$0x3] %vm1733_vm6, %v7588_v6  ;;  %1734 = vst.msk [vmem:[#allocation3 + $0x8] sm:$0x3] %vm1733_vm6, %v7588_v6  ;;  %v7281_v11 = vpack.c.bf16 %v1771_v10, %v1770_v9  ;;  %v6075_v57 = vld [vmem:[%s8818_s3 + $0x68] sm:$0xff] }
  0x18   : > { %v1421_v1 = vld [vmem:[#allocation2 + $0x91] sm:$0xff]  ;;  %1735 = vst.msk [vmem:[#allocation3 + $0x10] sm:$0xff] %vm1731_vm5, %v7588_v6  ;;  %1739 = vst.msk [vmem:[#allocation3 + $0x30] sm:$0xff] %vm1731_vm5, %v7588_v6  ;;  %7278 = vmatprep.subr.bf16.mxu1 %v7277_v5  ;;  %v6032_v12 = vld [vmem:[%s8817_s2] ss:$0 sm:$0xff] }
  0x19   : > { %v7743_v20 = vld [vmem:[#allocation2 + $0x11] sm:$0xff]  ;;  %v7745_v21 = vld [vmem:[#allocation2 + $0x21] sm:$0xff]  ;;  %1736 = vst.msk [vmem:[#allocation3 + $0x18] sm:$0x3] %vm1733_vm6, %v7588_v6  ;;  %1740 = vst.msk [vmem:[#allocation3 + $0x38] sm:$0x3] %vm1733_vm6, %v7588_v6  ;;  %7280 = vmatpush3.bf16.msra.mxu1 %v7277_v5 }
  0x1a   : > { %6670 = vmatmul.mubr.msk.f32.vlgmr.msra.gmra.mrb[0].mxu0 %vm341_vm1, %v7743_v20  ;;  %v7753_v22 = vld [vmem:[#allocation2 + $0x31] sm:$0xff]  ;;  %v7755_v23 = vld [vmem:[#allocation2 + $0x41] sm:$0xff]  ;;  %1741 = vst.msk [vmem:[#allocation3 + $0x40] sm:$0xff] %vm1731_vm5, %v7588_v6  ;;  %1743 = vst.msk [vmem:[#allocation3 + $0x50] sm:$0xff] %vm1731_vm5, %v7588_v6 }
  0x1b   : > { %7234 = vmatpush3.bf16.msk.msra.mxu0 %vm7654_vm3, %v7229_v7  ;;  %6672 = vmatprep.mubr.msk.f32.mxu0 %vm341_vm1, %v7745_v21  ;;  %v7763_v24 = vld [vmem:[#allocation2 + $0x51] sm:$0xff]  ;;  %v7765_v25 = vld [vmem:[#allocation2 + $0x61] sm:$0xff]  ;;  %1742 = vst.msk [vmem:[#allocation3 + $0x48] sm:$0x3] %vm1733_vm6, %v7588_v6  ;;  %1744 = vst.msk [vmem:[#allocation3 + $0x58] sm:$0x3] %vm1733_vm6, %v7588_v6 }
  0x1c   : > { %7237 = vmatprep.subr.msk.bf16.mxu0 %vm7654_vm3, %v7235_v19  ;;  %v7771_v26 = vld [vmem:[#allocation2 + $0x71] sm:$0xff]  ;;  %v7782_v31 = vld [vmem:[#allocation2 + $0x20] sm:$0xff]  ;;  %1745 = vst.msk [vmem:[#allocation3 + $0x60] sm:$0xff] %vm1731_vm5, %v7588_v6  ;;  %1747 = vst.msk [vmem:[#allocation3 + $0x70] sm:$0xff] %vm1731_vm5, %v7588_v6 }
  0x1d   : > { %v373_v30 = vld [vmem:[#allocation2 + $0x10] sm:$0xff]  ;;  %v7791_v34 = vld [vmem:[#allocation2 + $0x40] sm:$0xff]  ;;  %1746 = vst.msk [vmem:[#allocation3 + $0x68] sm:$0x3] %vm1733_vm6, %v7588_v6  ;;  %1748 = vst.msk [vmem:[#allocation3 + $0x78] sm:$0x3] %vm1733_vm6, %v7588_v6 }
  0x1e   : > { %6673 = vmatmul.mubr.msk.f32.gmra.mrb[2].mxu0 %vm341_vm1, %v7753_v22  ;;  %v7789_v33 = vld [vmem:[#allocation2 + $0x30] sm:$0xff]  ;;  %v7801_v36 = vld [vmem:[#allocation2 + $0x60] sm:$0xff]  ;;  %1749 = vst.msk [vmem:[#allocation3 + $0x80] sm:$0xff] %vm1731_vm5, %v7588_v6  ;;  %1751 = vst.msk [vmem:[#allocation3 + $0x90] sm:$0xff] %vm1731_vm5, %v7588_v6 }
  0x1f   : > { %6675 = vmatprep.mubr.msk.f32.mxu0 %vm341_vm1, %v7755_v23  ;;  %v7799_v35 = vld [vmem:[#allocation2 + $0x50] sm:$0xff]  ;;  %v7818_v42 = vld [vmem:[#allocation2 + $0x22] sm:$0xff]  ;;  %1750 = vst.msk [vmem:[#allocation3 + $0x88] sm:$0x3] %vm1733_vm6, %v7588_v6  ;;  %1752 = vst.msk [vmem:[#allocation3 + $0x98] sm:$0x3] %vm1733_vm6, %v7588_v6 }
  0x20   : > { %v7807_v37 = vld [vmem:[#allocation2 + $0x70] sm:$0xff]  ;;  %v7827_v45 = vld [vmem:[#allocation2 + $0x42] sm:$0xff]  ;;  %v6097_v9 = vld [vmem:[%s8818_s3 + $0x98] sm:$0xff]  ;;  %3108 = vst.msk [vmem:[#allocation4 + $0x20] sm:$0xff] %vm3102_vm7, %v7588_v6 }
  0x21   : > { %v659_v41 = vld [vmem:[#allocation2 + $0x12] sm:$0xff]  ;;  %v7837_v47 = vld [vmem:[#allocation2 + $0x62] sm:$0xff]  ;;  %3109 = vst.msk [vmem:[#allocation4 + $0x28] sm:$0x3] %vm3104_vm8, %v7588_v6  ;;  %3105 = vst.msk [vmem:[#allocation4 + $0x8] sm:$0x3] %vm3104_vm8, %v7588_v6 }
  0x22   : > { %6676 = vmatmul.mubr.msk.f32.gmra.mrb[4].mxu0 %vm341_vm1, %v7763_v24  ;;  %v7825_v44 = vld [vmem:[#allocation2 + $0x32] sm:$0xff]  ;;  %v816_v52 = vld [vmem:[#allocation2 + $0x80] sm:$0xff]  ;;  %v6035_v7 = vld [vmem:[%s8818_s3 + $0x28] sm:$0xff]  ;;  %3103 = vst.msk [vmem:[#allocation4] sm:$0xff] %vm3102_vm7, %v7588_v6 }
  0x23   : > { %6678 = vmatprep.mubr.msk.f32.mxu0 %vm341_vm1, %v7765_v25  ;;  %v7835_v46 = vld [vmem:[#allocation2 + $0x52] sm:$0xff]  ;;  %v967_v56 = vld [vmem:[#allocation2 + $0x81] sm:$0xff]  ;;  %6813 = vmatprep.subr.mxu1 %v6035_v7  ;;  %3106 = vst.msk [vmem:[#allocation4 + $0x10] sm:$0xff] %vm3102_vm7, %v7588_v6  ;;  %3110 = vst.msk [vmem:[#allocation4 + $0x30] sm:$0xff] %vm3102_vm7, %v7588_v6 }
  0x24   : > { %v7843_v48 = vld [vmem:[#allocation2 + $0x72] sm:$0xff]  ;;  %v1118_v60 = vld [vmem:[#allocation2 + $0x82] sm:$0xff]  ;;  %6814 = vmatpush3.msra.mxu1 %v6035_v7  ;;  %3107 = vst.msk [vmem:[#allocation4 + $0x18] sm:$0x3] %vm3104_vm8, %v7588_v6  ;;  %3111 = vst.msk [vmem:[#allocation4 + $0x38] sm:$0x3] %vm3104_vm8, %v7588_v6 }
  0x25   : > { %v1572_v2 = vld [vmem:[#allocation2 + $0x92] sm:$0xff]  ;;  %v1773_v8 = vld [vmem:[#allocation3 + $0x1] sm:$0xff]  ;;  %7282 = vmatprep.subr.bf16.mxu1 %v7281_v11  ;;  %3112 = vst.msk [vmem:[#allocation4 + $0x40] sm:$0xff] %vm3102_vm7, %v7588_v6  ;;  %3114 = vst.msk [vmem:[#allocation4 + $0x50] sm:$0xff] %vm3102_vm7, %v7588_v6 }
  0x26   : > { %6679 = vmatmul.mubr.msk.f32.gmra.mrb[6].mxu0 %vm341_vm1, %v7771_v26  ;;  %6815 = vmatprep.mubr.msk.f32.mxu1 %vm1731_vm5, %v1773_v8  ;;  %v1762_v39 = vld [vmem:[#allocation3] sm:$0xff]  ;;  %v6087_v7 = vld [vmem:[%s8818_s3 + $0x88] sm:$0xff]  ;;  %v6096_v8 = vld [vmem:[%s8818_s3 + $0x90] sm:$0xff]  ;;  %3113 = vst.msk [vmem:[#allocation4 + $0x48] sm:$0x3] %vm3104_vm8, %v7588_v6 }
  0x27   : > { %6685 = vmatprep.mubr.msk.f32.mxu0 %vm341_vm1, %v372_v27  ;;  %v6052_v27 = vld [vmem:[%s8818_s3 + $0x30] sm:$0xff]  ;;  %v6086_v3 = vld [vmem:[%s8818_s3 + $0x80] sm:$0xff]  ;;  %v7301_v10 = vpack.c.bf16 %v6097_v9, %v6096_v8  ;;  %3115 = vst.msk [vmem:[#allocation4 + $0x58] sm:$0x3] %vm3104_vm8, %v7588_v6  ;;  %3117 = vst.msk [vmem:[#allocation4 + $0x68] sm:$0x3] %vm3104_vm8, %v7588_v6 }
  0x28   : > { %3116 = vst.msk [vmem:[#allocation4 + $0x60] sm:$0xff] %vm3102_vm7, %v7588_v6  ;;  %3118 = vst.msk [vmem:[#allocation4 + $0x70] sm:$0xff] %vm3102_vm7, %v7588_v6  ;;  %v6179_v8 = vld [vmem:[%s8820_s5 + $0x14] sm:$0xf] }
  0x29   : > { %3119 = vst.msk [vmem:[#allocation4 + $0x78] sm:$0x3] %vm3104_vm8, %v7588_v6  ;;  %3121 = vst.msk [vmem:[#allocation4 + $0x88] sm:$0x3] %vm3104_vm8, %v7588_v6 }
  0x2a   : > { %6686 = vmatmul.mubr.msk.f32.vlgmr.msra.gmra.mrb[0].mxu0 %vm341_vm1, %v373_v30  ;;  %3120 = vst.msk [vmem:[#allocation4 + $0x80] sm:$0xff] %vm3102_vm7, %v7588_v6  ;;  %3122 = vst.msk [vmem:[#allocation4 + $0x90] sm:$0xff] %vm3102_vm7, %v7588_v6 }
  0x2b   : > { %7240 = vmatpush3.bf16.msk.msra.mxu0 %vm7654_vm3, %v7235_v19  ;;  %6688 = vmatprep.mubr.msk.f32.mxu0 %vm341_vm1, %v7782_v31  ;;  %3123 = vst.msk [vmem:[#allocation4 + $0x98] sm:$0x3] %vm3104_vm8, %v7588_v6 }
  0x2c   : > { %7243 = vmatprep.subr.msk.bf16.mxu0 %vm7654_vm3, %v7241_v32  ;;  %4488 = vst.msk [vmem:[#allocation5 + $0x20] sm:$0xff] %vm4482_vm10, %v7588_v6  ;;  %4483 = vst.msk [vmem:[#allocation5] sm:$0xff] %vm4482_vm10, %v7588_v6 }
  0x2d   : > { %4489 = vst.msk [vmem:[#allocation5 + $0x28] sm:$0x3] %vm4484_vm11, %v7588_v6  ;;  %4485 = vst.msk [vmem:[#allocation5 + $0x8] sm:$0x3] %vm4484_vm11, %v7588_v6 }
  0x2e   : > { %6689 = vmatmul.mubr.msk.f32.gmra.mrb[2].mxu0 %vm341_vm1, %v7789_v33  ;;  %4486 = vst.msk [vmem:[#allocation5 + $0x10] sm:$0xff] %vm4482_vm10, %v7588_v6  ;;  %4490 = vst.msk [vmem:[#allocation5 + $0x30] sm:$0xff] %vm4482_vm10, %v7588_v6 }
  0x2f   : > { %6691 = vmatprep.mubr.msk.f32.mxu0 %vm341_vm1, %v7791_v34  ;;  %4487 = vst.msk [vmem:[#allocation5 + $0x18] sm:$0x3] %vm4484_vm11, %v7588_v6  ;;  %4491 = vst.msk [vmem:[#allocation5 + $0x38] sm:$0x3] %vm4484_vm11, %v7588_v6 }
  0x30   : > { %4492 = vst.msk [vmem:[#allocation5 + $0x40] sm:$0xff] %vm4482_vm10, %v7588_v6  ;;  %4494 = vst.msk [vmem:[#allocation5 + $0x50] sm:$0xff] %vm4482_vm10, %v7588_v6 }
  0x31   : > { %4493 = vst.msk [vmem:[#allocation5 + $0x48] sm:$0x3] %vm4484_vm11, %v7588_v6  ;;  %4495 = vst.msk [vmem:[#allocation5 + $0x58] sm:$0x3] %vm4484_vm11, %v7588_v6 }
  0x32   : > { %6692 = vmatmul.mubr.msk.f32.gmra.mrb[4].mxu0 %vm341_vm1, %v7799_v35  ;;  %4496 = vst.msk [vmem:[#allocation5 + $0x60] sm:$0xff] %vm4482_vm10, %v7588_v6  ;;  %4498 = vst.msk [vmem:[#allocation5 + $0x70] sm:$0xff] %vm4482_vm10, %v7588_v6 }
  0x33   : > { %6694 = vmatprep.mubr.msk.f32.mxu0 %vm341_vm1, %v7801_v36  ;;  %4497 = vst.msk [vmem:[#allocation5 + $0x68] sm:$0x3] %vm4484_vm11, %v7588_v6  ;;  %4499 = vst.msk [vmem:[#allocation5 + $0x78] sm:$0x3] %vm4484_vm11, %v7588_v6 }
  0x34   : > { %4500 = vst.msk [vmem:[#allocation5 + $0x80] sm:$0xff] %vm4482_vm10, %v7588_v6  ;;  %4502 = vst.msk [vmem:[#allocation5 + $0x90] sm:$0xff] %vm4482_vm10, %v7588_v6 }
  0x35   : > { %4501 = vst.msk [vmem:[#allocation5 + $0x88] sm:$0x3] %vm4484_vm11, %v7588_v6  ;;  %4503 = vst.msk [vmem:[#allocation5 + $0x98] sm:$0x3] %vm4484_vm11, %v7588_v6 }
  0x36   : > { %6695 = vmatmul.mubr.msk.f32.gmra.mrb[6].mxu0 %vm341_vm1, %v7807_v37 }
  0x37   : > { %6701 = vmatprep.mubr.msk.f32.mxu0 %vm341_vm1, %v658_v38 }
  0x3a   : > { %6702 = vmatmul.mubr.msk.f32.vlgmr.msra.gmra.mrb[0].mxu0 %vm341_vm1, %v659_v41 }
  0x3b   : > { %7246 = vmatpush3.bf16.msk.msra.mxu0 %vm7654_vm3, %v7241_v32  ;;  %6704 = vmatprep.mubr.msk.f32.mxu0 %vm341_vm1, %v7818_v42 }
  0x3c   : > { %7249 = vmatprep.subr.msk.bf16.mxu0 %vm7654_vm3, %v7247_v43 }
  0x3e   : > { %6705 = vmatmul.mubr.msk.f32.gmra.mrb[2].mxu0 %vm341_vm1, %v7825_v44 }
  0x3f   : > { %6707 = vmatprep.mubr.msk.f32.mxu0 %vm341_vm1, %v7827_v45 }
  0x42   : > { %6708 = vmatmul.mubr.msk.f32.gmra.mrb[4].mxu0 %vm341_vm1, %v7835_v46 }
  0x43   : > { %6710 = vmatprep.mubr.msk.f32.mxu0 %vm341_vm1, %v7837_v47 }
  0x46   : > { %6711 = vmatmul.mubr.msk.f32.gmra.mrb[6].mxu0 %vm341_vm1, %v7843_v48 }
  0x47   : > { %6717 = vmatprep.mubr.msk.f32.mxu0 %vm341_vm1, %v373_v30 }
  0x4a   : > { %6718 = vmatmul.mubr.msk.f32.vlgmr.msra.gmra.mrb[0].mxu0 %vm341_vm1, %v7782_v31 }
  0x4b   : > { %7252 = vmatpush3.bf16.msk.msra.mxu0 %vm7654_vm3, %v7247_v43  ;;  %6720 = vmatprep.mubr.msk.f32.mxu0 %vm341_vm1, %v7789_v33 }
  0x4c   : > { %7255 = vmatprep.subr.msk.bf16.mxu0 %vm7654_vm3, %v7253_v51 }
  0x4e   : > { %6721 = vmatmul.mubr.msk.f32.gmra.mrb[2].mxu0 %vm341_vm1, %v7791_v34 }
  0x4f   : > { %6723 = vmatprep.mubr.msk.f32.mxu0 %vm341_vm1, %v7799_v35 }
  0x52   : > { %6724 = vmatmul.mubr.msk.f32.gmra.mrb[4].mxu0 %vm341_vm1, %v7801_v36 }
  0x53   : > { %6726 = vmatprep.mubr.msk.f32.mxu0 %vm341_vm1, %v7807_v37 }
  0x56   : > { %6727 = vmatmul.mubr.msk.f32.gmra.mrb[6].mxu0 %vm341_vm1, %v816_v52 }
  0x57   : > { %6733 = vmatprep.mubr.msk.f32.mxu0 %vm341_vm1, %v7743_v20 }
  0x5a   : > { %6734 = vmatmul.mubr.msk.f32.vlgmr.msra.gmra.mrb[0].mxu0 %vm341_vm1, %v7745_v21 }
  0x5b   : > { %7258 = vmatpush3.bf16.msk.msra.mxu0 %vm7654_vm3, %v7253_v51  ;;  %6736 = vmatprep.mubr.msk.f32.mxu0 %vm341_vm1, %v7753_v22 }
  0x5c   : > { %7261 = vmatprep.subr.msk.bf16.mxu0 %vm7654_vm3, %v7259_v55 }
  0x5e   : > { %6737 = vmatmul.mubr.msk.f32.gmra.mrb[2].mxu0 %vm341_vm1, %v7755_v23 }
  0x5f   : > { %6739 = vmatprep.mubr.msk.f32.mxu0 %vm341_vm1, %v7763_v24 }
  0x62   : > { %6740 = vmatmul.mubr.msk.f32.gmra.mrb[4].mxu0 %vm341_vm1, %v7765_v25 }
  0x63   : > { %6742 = vmatprep.mubr.msk.f32.mxu0 %vm341_vm1, %v7771_v26 }
  0x66   : > { %6743 = vmatmul.mubr.msk.f32.gmra.mrb[6].mxu0 %vm341_vm1, %v967_v56 }
  0x67   : > { %6749 = vmatprep.mubr.msk.f32.mxu0 %vm341_vm1, %v659_v41  ;;  %v6130_v41 = vld [vmem:[%s8820_s5 + $0x4] sm:$0xf] }
  0x6a   : > { %6750 = vmatmul.mubr.msk.f32.vlgmr.msra.gmra.mrb[0].mxu0 %vm341_vm1, %v7818_v42 }
  0x6b   : > { %7264 = vmatpush3.bf16.msk.msra.mxu0 %vm7654_vm3, %v7259_v55  ;;  %6752 = vmatprep.mubr.msk.f32.mxu0 %vm341_vm1, %v7825_v44 }
  0x6c   : > { %7267 = vmatprep.subr.msk.bf16.mxu0 %vm7654_vm3, %v7265_v59 }
  0x6e   : > { %6753 = vmatmul.mubr.msk.f32.gmra.mrb[2].mxu0 %vm341_vm1, %v7827_v45 }
  0x6f   : > { %6755 = vmatprep.mubr.msk.f32.mxu0 %vm341_vm1, %v7835_v46 }
  0x72   : > { %6756 = vmatmul.mubr.msk.f32.gmra.mrb[4].mxu0 %vm341_vm1, %v7837_v47 }
  0x73   : > { %6758 = vmatprep.mubr.msk.f32.mxu0 %vm341_vm1, %v7843_v48 }
  0x76   : > { %6759 = vmatmul.mubr.msk.f32.gmra.mrb[6].mxu0 %vm341_vm1, %v1118_v60 }
  0x77   : > { %6765 = vmatprep.mubr.msk.f32.mxu0 %vm341_vm1, %v7782_v31 }
  0x7a   : > { %6766 = vmatmul.mubr.msk.f32.vlgmr.msra.gmra.mrb[0].mxu0 %vm341_vm1, %v7789_v33 }
  0x7b   : > { %7270 = vmatpush3.bf16.msk.msra.mxu0 %vm7654_vm3, %v7265_v59  ;;  %6768 = vmatprep.mubr.msk.f32.mxu0 %vm341_vm1, %v7791_v34  ;;  %v7285_v34 = vpack.c.bf16 %v6053_v28, %v6052_v27  ;;  %v6129_v27 = vld [vmem:[%s8819_s4] ss:$0 sm:$0xff] }
  0x7c   : > { %7273 = vmatprep.subr.msk.bf16.mxu0 %vm7654_vm3, %v7271_v63 }
  0x7e   : > { %6769 = vmatmul.mubr.msk.f32.gmra.mrb[2].mxu0 %vm341_vm1, %v7799_v35 }
  0x7f   : > { %6771 = vmatprep.mubr.msk.f32.mxu0 %vm341_vm1, %v7801_v36 }
  0x82   : > { %6772 = vmatmul.mubr.msk.f32.gmra.mrb[4].mxu0 %vm341_vm1, %v7807_v37 }
  0x83   : > { %6774 = vmatprep.mubr.msk.f32.mxu0 %vm341_vm1, %v816_v52  ;;  %v2043_v52 = vld [vmem:[#allocation3 + $0x2] sm:$0xff] }
  0x86   : > { %6775 = vmatmul.mubr.msk.f32.gmra.mrb[6].mxu0 %vm341_vm1, %v1270_v0 }
  0x87   : > { %6781 = vmatprep.mubr.msk.f32.mxu0 %vm341_vm1, %v7745_v21 }
  0x8a   : > { %6782 = vmatmul.mubr.msk.f32.vlgmr.msra.gmra.mrb[0].mxu0 %vm341_vm1, %v7753_v22 }
  0x8b   : > { %7276 = vmatpush3.bf16.msk.msra.mxu0 %vm7654_vm3, %v7271_v63  ;;  %6784 = vmatprep.mubr.msk.f32.mxu0 %vm341_vm1, %v7755_v23 }
  0x8c   : > { %6971 = vmatprep.subr.msk.mxu0 %vm417_vm0, %v6130_v41 }
  0x8e   : > { %6785 = vmatmul.mubr.msk.f32.gmra.mrb[2].mxu0 %vm341_vm1, %v7763_v24 }
  0x8f   : > { %6787 = vmatprep.mubr.msk.f32.mxu0 %vm341_vm1, %v7765_v25  ;;  %v1772_v25 = vld [vmem:[%s8818_s3 + $0x10] sm:$0xff] }
  0x92   : > { %6788 = vmatmul.mubr.msk.f32.gmra.mrb[4].mxu0 %vm341_vm1, %v7771_v26 }
  0x93   : > { %6790 = vmatprep.mubr.msk.f32.mxu0 %vm341_vm1, %v967_v56  ;;  %v6074_v56 = vld [vmem:[%s8818_s3 + $0x60] sm:$0xff] }
  0x94   : > { %v7293_v59 = vpack.c.bf16 %v6075_v57, %v6074_v56 }
  0x96   : > { %6791 = vmatmul.mubr.msk.f32.gmra.mrb[6].mxu0 %vm341_vm1, %v1421_v1  ;;  %v6076_v1 = vld [vmem:[%s8818_s3 + $0x70] sm:$0xff] }
  0x97   : > { %6797 = vmatprep.mubr.msk.f32.mxu0 %vm341_vm1, %v7818_v42  ;;  %v6054_v42 = vld [vmem:[%s8818_s3 + $0x40] sm:$0xff] }
  0x9a   : > { %6798 = vmatmul.mubr.msk.f32.vlgmr.msra.gmra.mrb[0].mxu0 %vm341_vm1, %v7825_v44  ;;  %v6063_v44 = vld [vmem:[%s8818_s3 + $0x48] sm:$0xff] }
  0x9b   : > { %6800 = vmatprep.mubr.msk.f32.mxu0 %vm341_vm1, %v7827_v45  ;;  %6972 = vmatpush3.msk.msra.mxu0 %vm417_vm0, %v6130_v41  ;;  %v6064_v45 = vld [vmem:[%s8818_s3 + $0x50] sm:$0xff]  ;;  %v6149_v41 = vld [vmem:[%s8820_s5 + $0x8] sm:$0xf] }
  0x9e   : > { %6801 = vmatmul.mubr.msk.f32.gmra.mrb[2].mxu0 %vm341_vm1, %v7835_v46 }
  0x9f   : > { %6803 = vmatprep.mubr.msk.f32.mxu0 %vm341_vm1, %v7837_v47  ;;  %v7289_v47 = vpack.c.bf16 %v6064_v45, %v6063_v44 }
  0xa2   : > { %6804 = vmatmul.mubr.msk.f32.gmra.mrb[4].mxu0 %vm341_vm1, %v7843_v48 }
  0xa3   : > { %6806 = vmatprep.mubr.msk.f32.mxu0 %vm341_vm1, %v1118_v60 }
  0xa6   : > { %6807 = vmatmul.mubr.msk.f32.gmra.mrb[6].mxu0 %vm341_vm1, %v1572_v2  ;;  %v6085_v2 = vld [vmem:[%s8818_s3 + $0x78] sm:$0xff] }
  0xa7   : > { %v7297_v4 = vpack.c.bf16 %v6086_v3, %v6085_v2 }
 0x16d   : > { %v6799_v13 = vpop.f32.mrb[0].mxu0 }
 0x16e   : > { %v1724_v14 = vadd.f32 %v6799_v13, %v6032_v12  ;;  %v1669_v15 = vpop.f32.mrb[1].mxu0  ;;  %v6107_v13 = vld [vmem:[%s8818_s3 + $0xa8] sm:$0xff] }
 0x16f   : > { %v1723_v16 = vadd.f32 %v6032_v12, %v1669_v15 }
 0x170   : > { %1755 = vst.msk [vmem:[#allocation3 + $0x21] sm:$0xff] %vm1731_vm5, %v1724_v14  ;;  %v6108_v14 = vld [vmem:[%s8818_s3 + $0xb0] sm:$0xff] }
 0x171   : > { %1754 = vst.msk [vmem:[#allocation3 + $0x11] sm:$0xff] %vm1731_vm5, %v1723_v16  ;;  %v6802_v17 = vpop.f32.mrb[2].mxu0  ;;  %v7305_v15 = vpack.c.bf16 %v6108_v14, %v6107_v13  ;;  %v6209_v14 = vld [vmem:[%s8820_s5 + $0x20] sm:$0xf] }
 0x172   : > { %v1726_v18 = vadd.f32 %v6802_v17, %v6032_v12  ;;  %v1679_v19 = vpop.f32.mrb[3].mxu0  ;;  %v6109_v17 = vld [vmem:[%s8818_s3 + $0xb8] sm:$0xff] }
 0x173   : > { %v1725_v20 = vadd.f32 %v6032_v12, %v1679_v19  ;;  %v6119_v19 = vld [vmem:[%s8818_s3 + $0xc8] sm:$0xff] }
 0x174   : > { %1757 = vst.msk [vmem:[#allocation3 + $0x41] sm:$0xff] %vm1731_vm5, %v1726_v18  ;;  %v6118_v18 = vld [vmem:[%s8818_s3 + $0xc0] sm:$0xff] }
 0x175   : > { %1756 = vst.msk [vmem:[#allocation3 + $0x31] sm:$0xff] %vm1731_vm5, %v1725_v20  ;;  %v6805_v21 = vpop.f32.mrb[4].mxu0  ;;  %v7309_v20 = vpack.c.bf16 %v6119_v19, %v6118_v18  ;;  %v4522_v18 = vld [vmem:[#allocation5 + $0x1] sm:$0xff] }
 0x176   : > { %v1728_v22 = vadd.f32 %v6805_v21, %v6032_v12  ;;  %v1689_v23 = vpop.f32.mrb[5].mxu0  ;;  %v2647_v21 = vld [vmem:[#allocation3 + $0x90] sm:$0xff]  ;;  %v4521_v19 = vld [vmem:[%s8822_s7] sm:$0x3f] }
 0x177   : > { %v1727_v24 = vadd.f32 %v6032_v12, %v1689_v23  ;;  %v8052_v30 = vld [vmem:[#allocation3 + $0x21] sm:$0xff]  ;;  %v2796_v23 = vld [vmem:[#allocation3 + $0x91] sm:$0xff] }
 0x178   : > { %1759 = vst.msk [vmem:[#allocation3 + $0x61] sm:$0xff] %vm1731_vm5, %v1728_v22  ;;  %v8041_v26 = vld [vmem:[#allocation3 + $0x11] sm:$0xff]  ;;  %v8094_v46 = vld [vmem:[#allocation3 + $0x20] sm:$0xff] }
 0x179   : > { %1758 = vst.msk [vmem:[#allocation3 + $0x51] sm:$0xff] %vm1731_vm5, %v1727_v24  ;;  %v6808_v29 = vpop.f32.mrb[6].mxu0  ;;  %6816 = vmatmul.mubr.msk.f32.vlgmr.msra.gmra.mrb[0].mxu1 %vm1731_vm5, %v8041_v26  ;;  %v1763_v43 = vld [vmem:[#allocation3 + $0x10] sm:$0xff]  ;;  %v8129_v58 = vld [vmem:[#allocation3 + $0x22] sm:$0xff] }
 0x17a   : > { %v1730_v31 = vadd.f32 %v6808_v29, %v6032_v12  ;;  %7284 = vmatpush3.bf16.msra.mxu1 %v7281_v11  ;;  %v1699_v32 = vpop.f32.mrb[7].mxu0  ;;  %6818 = vmatprep.mubr.msk.f32.mxu1 %vm1731_vm5, %v8052_v30  ;;  %v2044_v55 = vld [vmem:[#allocation3 + $0x12] sm:$0xff] }
 0x17b   : > { %v1729_v33 = vadd.f32 %v6032_v12, %v1699_v32  ;;  %6831 = vmatprep.subr.mxu1 %v1772_v25  ;;  %v8062_v36 = vld [vmem:[#allocation3 + $0x41] sm:$0xff]  ;;  %v6120_v22 = vld [vmem:[%s8818_s3 + $0xd0] sm:$0xff] }
 0x17c   : > { %1761 = vst.msk [vmem:[#allocation3 + $0x81] sm:$0xff] %vm1731_vm5, %v1730_v31  ;;  %v8057_v35 = vld [vmem:[#allocation3 + $0x31] sm:$0xff]  ;;  %v8102_v49 = vld [vmem:[#allocation3 + $0x40] sm:$0xff] }
 0x17d   : > { %1760 = vst.msk [vmem:[#allocation3 + $0x71] sm:$0xff] %vm1731_vm5, %v1729_v33  ;;  %6819 = vmatmul.mubr.msk.f32.gmra.mrb[2].mxu1 %vm1731_vm5, %v8057_v35  ;;  %v8098_v48 = vld [vmem:[#allocation3 + $0x30] sm:$0xff]  ;;  %v8137_v61 = vld [vmem:[#allocation3 + $0x42] sm:$0xff] }
 0x17e   : > { %6821 = vmatprep.mubr.msk.f32.mxu1 %vm1731_vm5, %v8062_v36  ;;  %6832 = vmatpush3.msra.mxu1 %v1772_v25  ;;  %v8133_v60 = vld [vmem:[#allocation3 + $0x32] sm:$0xff]  ;;  %v6098_v12 = vld [vmem:[%s8818_s3 + $0xa0] sm:$0xff] }
 0x17f   : > { %7286 = vmatprep.subr.bf16.mxu1 %v7285_v34  ;;  %v8070_v38 = vld [vmem:[#allocation3 + $0x61] sm:$0xff]  ;;  %v2945_v24 = vld [vmem:[#allocation3 + $0x92] sm:$0xff] }
 0x180   : > { %v8066_v37 = vld [vmem:[#allocation3 + $0x51] sm:$0xff]  ;;  %v8110_v51 = vld [vmem:[#allocation3 + $0x60] sm:$0xff] }
 0x181   : > { %6822 = vmatmul.mubr.msk.f32.gmra.mrb[4].mxu1 %vm1731_vm5, %v8066_v37  ;;  %v8106_v50 = vld [vmem:[#allocation3 + $0x50] sm:$0xff]  ;;  %v8145_v63 = vld [vmem:[#allocation3 + $0x62] sm:$0xff] }
 0x182   : > { %6824 = vmatprep.mubr.msk.f32.mxu1 %vm1731_vm5, %v8070_v38  ;;  %v8141_v62 = vld [vmem:[#allocation3 + $0x52] sm:$0xff]  ;;  %v3142_v25 = vld [vmem:[#allocation4 + $0x1] sm:$0xff] }
 0x183   : > { %v2199_v5 = vld [vmem:[#allocation3 + $0x80] sm:$0xff]  ;;  %6973 = vmatprep.mubr.msk.f32.mxu0 %vm3102_vm7, %v3142_v25 }
 0x184   : > { %v8074_v40 = vld [vmem:[#allocation3 + $0x71] sm:$0xff]  ;;  %v2348_v11 = vld [vmem:[#allocation3 + $0x81] sm:$0xff] }
 0x185   : > { %6825 = vmatmul.mubr.msk.f32.gmra.mrb[6].mxu1 %vm1731_vm5, %v8074_v40  ;;  %v8114_v53 = vld [vmem:[#allocation3 + $0x70] sm:$0xff]  ;;  %v2497_v16 = vld [vmem:[#allocation3 + $0x82] sm:$0xff] }
 0x186   : > { %6833 = vmatprep.mubr.msk.f32.mxu1 %vm1731_vm5, %v1762_v39  ;;  %v8149_v0 = vld [vmem:[#allocation3 + $0x72] sm:$0xff] }
 0x189   : > { %6834 = vmatmul.mubr.msk.f32.vlgmr.msra.gmra.mrb[0].mxu1 %vm1731_vm5, %v1763_v43 }
 0x18a   : > { %7288 = vmatpush3.bf16.msra.mxu1 %v7285_v34  ;;  %6836 = vmatprep.mubr.msk.f32.mxu1 %vm1731_vm5, %v8094_v46 }
 0x18b   : > { %6849 = vmatprep.subr.mxu1 %v6054_v42 }
 0x18d   : > { %6837 = vmatmul.mubr.msk.f32.gmra.mrb[2].mxu1 %vm1731_vm5, %v8098_v48 }
 0x18e   : > { %6839 = vmatprep.mubr.msk.f32.mxu1 %vm1731_vm5, %v8102_v49  ;;  %6850 = vmatpush3.msra.mxu1 %v6054_v42 }
 0x18f   : > { %7290 = vmatprep.subr.bf16.mxu1 %v7289_v47 }
 0x191   : > { %6840 = vmatmul.mubr.msk.f32.gmra.mrb[4].mxu1 %vm1731_vm5, %v8106_v50 }
 0x192   : > { %6842 = vmatprep.mubr.msk.f32.mxu1 %vm1731_vm5, %v8110_v51 }
 0x195   : > { %6843 = vmatmul.mubr.msk.f32.gmra.mrb[6].mxu1 %vm1731_vm5, %v8114_v53 }
 0x196   : > { %6851 = vmatprep.mubr.msk.f32.mxu1 %vm1731_vm5, %v2043_v52 }
 0x199   : > { %6852 = vmatmul.mubr.msk.f32.vlgmr.msra.gmra.mrb[0].mxu1 %vm1731_vm5, %v2044_v55 }
 0x19a   : > { %7292 = vmatpush3.bf16.msra.mxu1 %v7289_v47  ;;  %6854 = vmatprep.mubr.msk.f32.mxu1 %vm1731_vm5, %v8129_v58 }
 0x19b   : > { %6867 = vmatprep.subr.mxu1 %v6065_v54 }
 0x19d   : > { %6855 = vmatmul.mubr.msk.f32.gmra.mrb[2].mxu1 %vm1731_vm5, %v8133_v60 }
 0x19e   : > { %6857 = vmatprep.mubr.msk.f32.mxu1 %vm1731_vm5, %v8137_v61  ;;  %6868 = vmatpush3.msra.mxu1 %v6065_v54 }
 0x19f   : > { %7294 = vmatprep.subr.bf16.mxu1 %v7293_v59 }
 0x1a1   : > { %6858 = vmatmul.mubr.msk.f32.gmra.mrb[4].mxu1 %vm1731_vm5, %v8141_v62 }
 0x1a2   : > { %6860 = vmatprep.mubr.msk.f32.mxu1 %vm1731_vm5, %v8145_v63 }
 0x1a5   : > { %6861 = vmatmul.mubr.msk.f32.gmra.mrb[6].mxu1 %vm1731_vm5, %v8149_v0 }
 0x1a6   : > { %6869 = vmatprep.mubr.msk.f32.mxu1 %vm1731_vm5, %v1763_v43 }
 0x1a9   : > { %6870 = vmatmul.mubr.msk.f32.vlgmr.msra.gmra.mrb[0].mxu1 %vm1731_vm5, %v8094_v46 }
 0x1aa   : > { %7296 = vmatpush3.bf16.msra.mxu1 %v7293_v59  ;;  %6872 = vmatprep.mubr.msk.f32.mxu1 %vm1731_vm5, %v8098_v48 }
 0x1ab   : > { %6885 = vmatprep.subr.mxu1 %v6076_v1 }
 0x1ad   : > { %6873 = vmatmul.mubr.msk.f32.gmra.mrb[2].mxu1 %vm1731_vm5, %v8102_v49 }
 0x1ae   : > { %6875 = vmatprep.mubr.msk.f32.mxu1 %vm1731_vm5, %v8106_v50  ;;  %6886 = vmatpush3.msra.mxu1 %v6076_v1 }
 0x1af   : > { %7298 = vmatprep.subr.bf16.mxu1 %v7297_v4 }
 0x1b1   : > { %6876 = vmatmul.mubr.msk.f32.gmra.mrb[4].mxu1 %vm1731_vm5, %v8110_v51 }
 0x1b2   : > { %6878 = vmatprep.mubr.msk.f32.mxu1 %vm1731_vm5, %v8114_v53 }
 0x1b5   : > { %6879 = vmatmul.mubr.msk.f32.gmra.mrb[6].mxu1 %vm1731_vm5, %v2199_v5 }
 0x1b6   : > { %6887 = vmatprep.mubr.msk.f32.mxu1 %vm1731_vm5, %v8041_v26  ;;  %v3141_v26 = vld [vmem:[%s8820_s5] sm:$0xf] }
 0x1b7   : > { %6985 = vmatprep.subr.msk.mxu0 %vm417_vm0, %v3141_v26 }
 0x1b9   : > { %6888 = vmatmul.mubr.msk.f32.vlgmr.msra.gmra.mrb[0].mxu1 %vm1731_vm5, %v8052_v30 }
 0x1ba   : > { %7300 = vmatpush3.bf16.msra.mxu1 %v7297_v4  ;;  %6890 = vmatprep.mubr.msk.f32.mxu1 %vm1731_vm5, %v8057_v35 }
 0x1bb   : > { %6903 = vmatprep.subr.mxu1 %v6087_v7 }
 0x1bd   : > { %6891 = vmatmul.mubr.msk.f32.gmra.mrb[2].mxu1 %vm1731_vm5, %v8062_v36 }
 0x1be   : > { %6893 = vmatprep.mubr.msk.f32.mxu1 %vm1731_vm5, %v8066_v37  ;;  %6904 = vmatpush3.msra.mxu1 %v6087_v7 }
 0x1bf   : > { %7302 = vmatprep.subr.bf16.mxu1 %v7301_v10 }
 0x1c1   : > { %6894 = vmatmul.mubr.msk.f32.gmra.mrb[4].mxu1 %vm1731_vm5, %v8070_v38 }
 0x1c2   : > { %6896 = vmatprep.mubr.msk.f32.mxu1 %vm1731_vm5, %v8074_v40 }
 0x1c5   : > { %6897 = vmatmul.mubr.msk.f32.gmra.mrb[6].mxu1 %vm1731_vm5, %v2348_v11 }
 0x1c6   : > { %6905 = vmatprep.mubr.msk.f32.mxu1 %vm1731_vm5, %v2044_v55  ;;  %v6159_v55 = vld [vmem:[%s8820_s5 + $0xc] sm:$0xf] }
 0x1c9   : > { %6906 = vmatmul.mubr.msk.f32.vlgmr.msra.gmra.mrb[0].mxu1 %vm1731_vm5, %v8129_v58 }
 0x1ca   : > { %7304 = vmatpush3.bf16.msra.mxu1 %v7301_v10  ;;  %6908 = vmatprep.mubr.msk.f32.mxu1 %vm1731_vm5, %v8133_v60  ;;  %v6189_v10 = vld [vmem:[%s8820_s5 + $0x18] sm:$0xf] }
 0x1cb   : > { %6921 = vmatprep.subr.mxu1 %v6098_v12 }
 0x1cd   : > { %6909 = vmatmul.mubr.msk.f32.gmra.mrb[2].mxu1 %vm1731_vm5, %v8137_v61 }
 0x1ce   : > { %6911 = vmatprep.mubr.msk.f32.mxu1 %vm1731_vm5, %v8141_v62  ;;  %6922 = vmatpush3.msra.mxu1 %v6098_v12  ;;  %v6199_v12 = vld [vmem:[%s8820_s5 + $0x1c] sm:$0xf] }
 0x1cf   : > { %7306 = vmatprep.subr.bf16.mxu1 %v7305_v15 }
 0x1d1   : > { %6912 = vmatmul.mubr.msk.f32.gmra.mrb[4].mxu1 %vm1731_vm5, %v8145_v63 }
 0x1d2   : > { %6914 = vmatprep.mubr.msk.f32.mxu1 %vm1731_vm5, %v8149_v0 }
 0x1d5   : > { %6915 = vmatmul.mubr.msk.f32.gmra.mrb[6].mxu1 %vm1731_vm5, %v2497_v16 }
 0x1d6   : > { %6923 = vmatprep.mubr.msk.f32.mxu1 %vm1731_vm5, %v8094_v46 }
 0x1d9   : > { %6924 = vmatmul.mubr.msk.f32.vlgmr.msra.gmra.mrb[0].mxu1 %vm1731_vm5, %v8098_v48 }
 0x1da   : > { %7308 = vmatpush3.bf16.msra.mxu1 %v7305_v15  ;;  %6926 = vmatprep.mubr.msk.f32.mxu1 %vm1731_vm5, %v8102_v49  ;;  %v4024_v15 = vld [vmem:[#allocation4 + $0x90] sm:$0xff] }
 0x1db   : > { %6939 = vmatprep.subr.mxu1 %v6109_v17 }
 0x1dd   : > { %6927 = vmatmul.mubr.msk.f32.gmra.mrb[2].mxu1 %vm1731_vm5, %v8106_v50 }
 0x1de   : > { %6929 = vmatprep.mubr.msk.f32.mxu1 %vm1731_vm5, %v8110_v51  ;;  %6940 = vmatpush3.msra.mxu1 %v6109_v17  ;;  %v3133_v51 = vld [vmem:[#allocation4] sm:$0xff]  ;;  %v4324_v17 = vld [vmem:[#allocation4 + $0x92] sm:$0xff] }
 0x1df   : > { %7310 = vmatprep.subr.bf16.mxu1 %v7309_v20 }
 0x1e1   : > { %6930 = vmatmul.mubr.msk.f32.gmra.mrb[4].mxu1 %vm1731_vm5, %v8114_v53  ;;  %v6220_v53 = vld [vmem:[%s8822_s7 + $0x8] sm:$0x3f] }
 0x1e2   : > { %6932 = vmatprep.mubr.msk.f32.mxu1 %vm1731_vm5, %v2199_v5 }
 0x1e5   : > { %6933 = vmatmul.mubr.msk.f32.gmra.mrb[6].mxu1 %vm1731_vm5, %v2647_v21 }
 0x1e6   : > { %6941 = vmatprep.mubr.msk.f32.mxu1 %vm1731_vm5, %v8052_v30 }
 0x1e9   : > { %6942 = vmatmul.mubr.msk.f32.vlgmr.msra.gmra.mrb[0].mxu1 %vm1731_vm5, %v8057_v35 }
 0x1ea   : > { %7312 = vmatpush3.bf16.msra.mxu1 %v7309_v20  ;;  %6944 = vmatprep.mubr.msk.f32.mxu1 %vm1731_vm5, %v8062_v36  ;;  %v6219_v20 = vld [vmem:[%s8821_s6] ss:$0 sm:$0xff] }
 0x1eb   : > { %6957 = vmatprep.subr.mxu1 %v6120_v22 }
 0x1ed   : > { %6945 = vmatmul.mubr.msk.f32.gmra.mrb[2].mxu1 %vm1731_vm5, %v8066_v37 }
 0x1ee   : > { %6947 = vmatprep.mubr.msk.f32.mxu1 %vm1731_vm5, %v8070_v38  ;;  %6958 = vmatpush3.msra.mxu1 %v6120_v22 }
 0x1ef   : > { %7097 = vmatprep.subr.msk.mxu1 %vm4556_vm9, %v6220_v53 }
 0x1f1   : > { %6948 = vmatmul.mubr.msk.f32.gmra.mrb[4].mxu1 %vm1731_vm5, %v8074_v40 }
 0x1f2   : > { %6950 = vmatprep.mubr.msk.f32.mxu1 %vm1731_vm5, %v2348_v11 }
 0x1f5   : > { %6951 = vmatmul.mubr.msk.f32.gmra.mrb[6].mxu1 %vm1731_vm5, %v2796_v23 }
 0x1f6   : > { %6959 = vmatprep.mubr.msk.f32.mxu1 %vm1731_vm5, %v8129_v58 }
 0x1f9   : > { %6960 = vmatmul.mubr.msk.f32.vlgmr.msra.gmra.mrb[0].mxu1 %vm1731_vm5, %v8133_v60 }
 0x1fa   : > { %6962 = vmatprep.mubr.msk.f32.mxu1 %vm1731_vm5, %v8137_v61  ;;  %7098 = vmatpush3.msk.msra.mxu1 %vm4556_vm9, %v6220_v53  ;;  %v3416_v61 = vld [vmem:[#allocation4 + $0x2] sm:$0xff] }
 0x1fb   : > { %7111 = vmatprep.subr.msk.mxu1 %vm4556_vm9, %v4521_v19 }
 0x1fd   : > { %6963 = vmatmul.mubr.msk.f32.gmra.mrb[2].mxu1 %vm1731_vm5, %v8141_v62 }
 0x1fe   : > { %6965 = vmatprep.mubr.msk.f32.mxu1 %vm1731_vm5, %v8145_v63 }
 0x201   : > { %6966 = vmatmul.mubr.msk.f32.gmra.mrb[4].mxu1 %vm1731_vm5, %v8149_v0  ;;  %v6169_v0 = vld [vmem:[%s8820_s5 + $0x10] sm:$0xf] }
 0x202   : > { %6968 = vmatprep.mubr.msk.f32.mxu1 %vm1731_vm5, %v2497_v16  ;;  %v4174_v16 = vld [vmem:[#allocation4 + $0x91] sm:$0xff] }
 0x205   : > { %6969 = vmatmul.mubr.msk.f32.gmra.mrb[6].mxu1 %vm1731_vm5, %v2945_v24 }
 0x206   : > { %7099 = vmatprep.mubr.msk.f32.mxu1 %vm4482_vm10, %v4522_v18 }
 0x2cc   : > { %v6961_v28 = vpop.f32.mrb[0].mxu1 }
 0x2cd   : > { %v3095_v29 = vadd.f32 %v6961_v28, %v6129_v27  ;;  %v3040_v30 = vpop.f32.mrb[1].mxu1 }
 0x2ce   : > { %v3094_v31 = vadd.f32 %v6129_v27, %v3040_v30 }
 0x2cf   : > { %3126 = vst.msk [vmem:[#allocation4 + $0x21] sm:$0xff] %vm3102_vm7, %v3095_v29 }
 0x2d0   : > { %3125 = vst.msk [vmem:[#allocation4 + $0x11] sm:$0xff] %vm3102_vm7, %v3094_v31  ;;  %v6964_v32 = vpop.f32.mrb[2].mxu1 }
 0x2d1   : > { %v3097_v33 = vadd.f32 %v6964_v32, %v6129_v27  ;;  %v3050_v34 = vpop.f32.mrb[3].mxu1 }
 0x2d2   : > { %v3096_v35 = vadd.f32 %v6129_v27, %v3050_v34 }
 0x2d3   : > { %3128 = vst.msk [vmem:[#allocation4 + $0x41] sm:$0xff] %vm3102_vm7, %v3097_v33  ;;  %v6239_v33 = vld [vmem:[%s8822_s7 + $0x10] sm:$0x3f] }
 0x2d4   : > { %3127 = vst.msk [vmem:[#allocation4 + $0x31] sm:$0xff] %vm3102_vm7, %v3096_v35  ;;  %v6967_v36 = vpop.f32.mrb[4].mxu1 }
 0x2d5   : > { %v3099_v37 = vadd.f32 %v6967_v36, %v6129_v27  ;;  %v3060_v38 = vpop.f32.mrb[5].mxu1 }
 0x2d6   : > { %v3098_v39 = vadd.f32 %v6129_v27, %v3060_v38  ;;  %v8338_v43 = vld [vmem:[#allocation4 + $0x21] sm:$0xff] }
 0x2d7   : > { %3130 = vst.msk [vmem:[#allocation4 + $0x61] sm:$0xff] %vm3102_vm7, %v3099_v37  ;;  %v8330_v40 = vld [vmem:[#allocation4 + $0x11] sm:$0xff]  ;;  %v8376_v56 = vld [vmem:[#allocation4 + $0x20] sm:$0xff] }
 0x2d8   : > { %3129 = vst.msk [vmem:[#allocation4 + $0x51] sm:$0xff] %vm3102_vm7, %v3098_v39  ;;  %v6970_v42 = vpop.f32.mrb[6].mxu1  ;;  %6974 = vmatmul.mubr.msk.f32.vlgmr.msra.gmra.mrb[8].mxu0 %vm3102_vm7, %v8330_v40  ;;  %v3134_v54 = vld [vmem:[#allocation4 + $0x10] sm:$0xff]  ;;  %v8407_v1 = vld [vmem:[#allocation4 + $0x22] sm:$0xff] }
 0x2d9   : > { %v3101_v44 = vadd.f32 %v6970_v42, %v6129_v27  ;;  %6986 = vmatpush3.msk.msra.mxu0 %vm417_vm0, %v3141_v26  ;;  %v3070_v45 = vpop.f32.mrb[7].mxu1  ;;  %6976 = vmatprep.mubr.msk.f32.mxu0 %vm3102_vm7, %v8338_v43  ;;  %v3417_v63 = vld [vmem:[#allocation4 + $0x12] sm:$0xff] }
 0x2da   : > { %v3100_v46 = vadd.f32 %v6129_v27, %v3070_v45  ;;  %6999 = vmatprep.subr.msk.mxu0 %vm417_vm0, %v6149_v41  ;;  %v8350_v48 = vld [vmem:[#allocation4 + $0x41] sm:$0xff] }
 0x2db   : > { %3132 = vst.msk [vmem:[#allocation4 + $0x81] sm:$0xff] %vm3102_vm7, %v3101_v44  ;;  %v8345_v47 = vld [vmem:[#allocation4 + $0x31] sm:$0xff]  ;;  %v8386_v58 = vld [vmem:[#allocation4 + $0x40] sm:$0xff] }
 0x2dc   : > { %3131 = vst.msk [vmem:[#allocation4 + $0x71] sm:$0xff] %vm3102_vm7, %v3100_v46  ;;  %6977 = vmatmul.mubr.msk.f32.gmra.mrb[10].mxu0 %vm3102_vm7, %v8345_v47  ;;  %v8382_v57 = vld [vmem:[#allocation4 + $0x30] sm:$0xff]  ;;  %v8417_v3 = vld [vmem:[#allocation4 + $0x42] sm:$0xff]  ;;  %v6249_v46 = vld [vmem:[%s8822_s7 + $0x18] sm:$0x3f] }
 0x2dd   : > { %6979 = vmatprep.mubr.msk.f32.mxu0 %vm3102_vm7, %v8350_v48  ;;  %v8413_v2 = vld [vmem:[#allocation4 + $0x32] sm:$0xff] }
 0x2de   : > { %v8358_v50 = vld [vmem:[#allocation4 + $0x61] sm:$0xff] }
 0x2df   : > { %v8354_v49 = vld [vmem:[#allocation4 + $0x51] sm:$0xff]  ;;  %v8394_v60 = vld [vmem:[#allocation4 + $0x60] sm:$0xff] }
 0x2e0   : > { %6980 = vmatmul.mubr.msk.f32.gmra.mrb[12].mxu0 %vm3102_vm7, %v8354_v49  ;;  %v8390_v59 = vld [vmem:[#allocation4 + $0x50] sm:$0xff]  ;;  %v8425_v5 = vld [vmem:[#allocation4 + $0x62] sm:$0xff] }
 0x2e1   : > { %6982 = vmatprep.mubr.msk.f32.mxu0 %vm3102_vm7, %v8358_v50  ;;  %v8421_v4 = vld [vmem:[#allocation4 + $0x52] sm:$0xff] }
 0x2e2   : > { %v3573_v9 = vld [vmem:[#allocation4 + $0x80] sm:$0xff] }
 0x2e3   : > { %v8362_v52 = vld [vmem:[#allocation4 + $0x71] sm:$0xff]  ;;  %v3723_v11 = vld [vmem:[#allocation4 + $0x81] sm:$0xff] }
 0x2e4   : > { %6983 = vmatmul.mubr.msk.f32.gmra.mrb[14].mxu0 %vm3102_vm7, %v8362_v52  ;;  %v8398_v62 = vld [vmem:[#allocation4 + $0x70] sm:$0xff]  ;;  %v3873_v13 = vld [vmem:[#allocation4 + $0x82] sm:$0xff] }
 0x2e5   : > { %6987 = vmatprep.mubr.msk.f32.mxu0 %vm3102_vm7, %v3133_v51  ;;  %v8429_v7 = vld [vmem:[#allocation4 + $0x72] sm:$0xff] }
 0x2e8   : > { %6988 = vmatmul.mubr.msk.f32.vlgmr.msra.gmra.mrb[8].mxu0 %vm3102_vm7, %v3134_v54 }
 0x2e9   : > { %7000 = vmatpush3.msk.msra.mxu0 %vm417_vm0, %v6149_v41  ;;  %6990 = vmatprep.mubr.msk.f32.mxu0 %vm3102_vm7, %v8376_v56 }
 0x2ea   : > { %7013 = vmatprep.subr.msk.mxu0 %vm417_vm0, %v6159_v55 }
 0x2ec   : > { %6991 = vmatmul.mubr.msk.f32.gmra.mrb[10].mxu0 %vm3102_vm7, %v8382_v57 }
 0x2ed   : > { %6993 = vmatprep.mubr.msk.f32.mxu0 %vm3102_vm7, %v8386_v58 }
 0x2f0   : > { %6994 = vmatmul.mubr.msk.f32.gmra.mrb[12].mxu0 %vm3102_vm7, %v8390_v59 }
 0x2f1   : > { %6996 = vmatprep.mubr.msk.f32.mxu0 %vm3102_vm7, %v8394_v60 }
 0x2f4   : > { %6997 = vmatmul.mubr.msk.f32.gmra.mrb[14].mxu0 %vm3102_vm7, %v8398_v62 }
 0x2f5   : > { %7001 = vmatprep.mubr.msk.f32.mxu0 %vm3102_vm7, %v3416_v61 }
 0x2f8   : > { %7002 = vmatmul.mubr.msk.f32.vlgmr.msra.gmra.mrb[8].mxu0 %vm3102_vm7, %v3417_v63 }
 0x2f9   : > { %7014 = vmatpush3.msk.msra.mxu0 %vm417_vm0, %v6159_v55  ;;  %7004 = vmatprep.mubr.msk.f32.mxu0 %vm3102_vm7, %v8407_v1  ;;  %v6259_v55 = vld [vmem:[%s8822_s7 + $0x20] sm:$0x3f] }
 0x2fa   : > { %7027 = vmatprep.subr.msk.mxu0 %vm417_vm0, %v6169_v0 }
 0x2fc   : > { %7005 = vmatmul.mubr.msk.f32.gmra.mrb[10].mxu0 %vm3102_vm7, %v8413_v2 }
 0x2fd   : > { %7007 = vmatprep.mubr.msk.f32.mxu0 %vm3102_vm7, %v8417_v3 }
 0x300   : > { %7008 = vmatmul.mubr.msk.f32.gmra.mrb[12].mxu0 %vm3102_vm7, %v8421_v4 }
 0x301   : > { %7010 = vmatprep.mubr.msk.f32.mxu0 %vm3102_vm7, %v8425_v5 }
 0x304   : > { %7011 = vmatmul.mubr.msk.f32.gmra.mrb[14].mxu0 %vm3102_vm7, %v8429_v7 }
 0x305   : > { %7015 = vmatprep.mubr.msk.f32.mxu0 %vm3102_vm7, %v3134_v54 }
 0x308   : > { %7016 = vmatmul.mubr.msk.f32.vlgmr.msra.gmra.mrb[8].mxu0 %vm3102_vm7, %v8376_v56 }
 0x309   : > { %7028 = vmatpush3.msk.msra.mxu0 %vm417_vm0, %v6169_v0  ;;  %7018 = vmatprep.mubr.msk.f32.mxu0 %vm3102_vm7, %v8382_v57  ;;  %v6279_v0 = vld [vmem:[%s8822_s7 + $0x30] sm:$0x3f] }
 0x30a   : > { %7041 = vmatprep.subr.msk.mxu0 %vm417_vm0, %v6179_v8 }
 0x30c   : > { %7019 = vmatmul.mubr.msk.f32.gmra.mrb[10].mxu0 %vm3102_vm7, %v8386_v58 }
 0x30d   : > { %7021 = vmatprep.mubr.msk.f32.mxu0 %vm3102_vm7, %v8390_v59 }
 0x310   : > { %7022 = vmatmul.mubr.msk.f32.gmra.mrb[12].mxu0 %vm3102_vm7, %v8394_v60 }
 0x311   : > { %7024 = vmatprep.mubr.msk.f32.mxu0 %vm3102_vm7, %v8398_v62 }
 0x314   : > { %7025 = vmatmul.mubr.msk.f32.gmra.mrb[14].mxu0 %vm3102_vm7, %v3573_v9 }
 0x315   : > { %7029 = vmatprep.mubr.msk.f32.mxu0 %vm3102_vm7, %v8330_v40 }
 0x318   : > { %7030 = vmatmul.mubr.msk.f32.vlgmr.msra.gmra.mrb[8].mxu0 %vm3102_vm7, %v8338_v43 }
 0x319   : > { %7042 = vmatpush3.msk.msra.mxu0 %vm417_vm0, %v6179_v8  ;;  %7032 = vmatprep.mubr.msk.f32.mxu0 %vm3102_vm7, %v8345_v47  ;;  %v5705_v8 = vld [vmem:[#allocation5 + $0x92] sm:$0xff] }
 0x31a   : > { %7055 = vmatprep.subr.msk.mxu0 %vm417_vm0, %v6189_v10 }
 0x31c   : > { %7033 = vmatmul.mubr.msk.f32.gmra.mrb[10].mxu0 %vm3102_vm7, %v8350_v48 }
 0x31d   : > { %7035 = vmatprep.mubr.msk.f32.mxu0 %vm3102_vm7, %v8354_v49 }
 0x320   : > { %7036 = vmatmul.mubr.msk.f32.gmra.mrb[12].mxu0 %vm3102_vm7, %v8358_v50 }
 0x321   : > { %7038 = vmatprep.mubr.msk.f32.mxu0 %vm3102_vm7, %v8362_v52 }
 0x324   : > { %7039 = vmatmul.mubr.msk.f32.gmra.mrb[14].mxu0 %vm3102_vm7, %v3723_v11 }
 0x325   : > { %7043 = vmatprep.mubr.msk.f32.mxu0 %vm3102_vm7, %v3417_v63 }
 0x328   : > { %7044 = vmatmul.mubr.msk.f32.vlgmr.msra.gmra.mrb[8].mxu0 %vm3102_vm7, %v8407_v1 }
 0x329   : > { %7056 = vmatpush3.msk.msra.mxu0 %vm417_vm0, %v6189_v10  ;;  %7046 = vmatprep.mubr.msk.f32.mxu0 %vm3102_vm7, %v8413_v2 }
 0x32a   : > { %7069 = vmatprep.subr.msk.mxu0 %vm417_vm0, %v6199_v12 }
 0x32c   : > { %7047 = vmatmul.mubr.msk.f32.gmra.mrb[10].mxu0 %vm3102_vm7, %v8417_v3 }
 0x32d   : > { %7049 = vmatprep.mubr.msk.f32.mxu0 %vm3102_vm7, %v8421_v4 }
 0x330   : > { %7050 = vmatmul.mubr.msk.f32.gmra.mrb[12].mxu0 %vm3102_vm7, %v8425_v5 }
 0x331   : > { %7052 = vmatprep.mubr.msk.f32.mxu0 %vm3102_vm7, %v8429_v7 }
 0x334   : > { %7053 = vmatmul.mubr.msk.f32.gmra.mrb[14].mxu0 %vm3102_vm7, %v3873_v13 }
 0x335   : > { %7057 = vmatprep.mubr.msk.f32.mxu0 %vm3102_vm7, %v8376_v56 }
 0x338   : > { %7058 = vmatmul.mubr.msk.f32.vlgmr.msra.gmra.mrb[8].mxu0 %vm3102_vm7, %v8382_v57 }
 0x339   : > { %7070 = vmatpush3.msk.msra.mxu0 %vm417_vm0, %v6199_v12  ;;  %7060 = vmatprep.mubr.msk.f32.mxu0 %vm3102_vm7, %v8386_v58 }
 0x33a   : > { %7083 = vmatprep.subr.msk.mxu0 %vm417_vm0, %v6209_v14 }
 0x33c   : > { %7061 = vmatmul.mubr.msk.f32.gmra.mrb[10].mxu0 %vm3102_vm7, %v8390_v59 }
 0x33d   : > { %7063 = vmatprep.mubr.msk.f32.mxu0 %vm3102_vm7, %v8394_v60 }
 0x340   : > { %7064 = vmatmul.mubr.msk.f32.gmra.mrb[12].mxu0 %vm3102_vm7, %v8398_v62  ;;  %v6269_v62 = vld [vmem:[%s8822_s7 + $0x28] sm:$0x3f] }
 0x341   : > { %7066 = vmatprep.mubr.msk.f32.mxu0 %vm3102_vm7, %v3573_v9  ;;  %v6309_v9 = vld [vmem:[%s8823_s8] ss:$0 sm:$0xff] }
 0x344   : > { %7067 = vmatmul.mubr.msk.f32.gmra.mrb[14].mxu0 %vm3102_vm7, %v4024_v15 }
 0x345   : > { %7071 = vmatprep.mubr.msk.f32.mxu0 %vm3102_vm7, %v8338_v43  ;;  %v4513_v43 = vld [vmem:[#allocation5] sm:$0xff] }
 0x348   : > { %7072 = vmatmul.mubr.msk.f32.vlgmr.msra.gmra.mrb[8].mxu0 %vm3102_vm7, %v8345_v47 }
 0x349   : > { %7084 = vmatpush3.msk.msra.mxu0 %vm417_vm0, %v6209_v14  ;;  %7074 = vmatprep.mubr.msk.f32.mxu0 %vm3102_vm7, %v8350_v48 }
 0x34c   : > { %7075 = vmatmul.mubr.msk.f32.gmra.mrb[10].mxu0 %vm3102_vm7, %v8354_v49 }
 0x34d   : > { %7077 = vmatprep.mubr.msk.f32.mxu0 %vm3102_vm7, %v8358_v50 }
 0x350   : > { %7078 = vmatmul.mubr.msk.f32.gmra.mrb[12].mxu0 %vm3102_vm7, %v8362_v52  ;;  %v4797_v52 = vld [vmem:[#allocation5 + $0x2] sm:$0xff] }
 0x351   : > { %7080 = vmatprep.mubr.msk.f32.mxu0 %vm3102_vm7, %v3723_v11 }
 0x354   : > { %7081 = vmatmul.mubr.msk.f32.gmra.mrb[14].mxu0 %vm3102_vm7, %v4174_v16 }
 0x355   : > { %7085 = vmatprep.mubr.msk.f32.mxu0 %vm3102_vm7, %v8407_v1 }
 0x358   : > { %7086 = vmatmul.mubr.msk.f32.vlgmr.msra.gmra.mrb[8].mxu0 %vm3102_vm7, %v8413_v2  ;;  %v6289_v2 = vld [vmem:[%s8822_s7 + $0x38] sm:$0x3f] }
 0x359   : > { %7088 = vmatprep.mubr.msk.f32.mxu0 %vm3102_vm7, %v8417_v3 }
 0x35c   : > { %7089 = vmatmul.mubr.msk.f32.gmra.mrb[10].mxu0 %vm3102_vm7, %v8421_v4  ;;  %v6299_v4 = vld [vmem:[%s8822_s7 + $0x40] sm:$0x3f] }
 0x35d   : > { %7091 = vmatprep.mubr.msk.f32.mxu0 %vm3102_vm7, %v8425_v5  ;;  %v5405_v5 = vld [vmem:[#allocation5 + $0x90] sm:$0xff] }
 0x360   : > { %7092 = vmatmul.mubr.msk.f32.gmra.mrb[12].mxu0 %vm3102_vm7, %v8429_v7  ;;  %v5555_v7 = vld [vmem:[#allocation5 + $0x91] sm:$0xff] }
 0x361   : > { %7094 = vmatprep.mubr.msk.f32.mxu0 %vm3102_vm7, %v3873_v13 }
 0x364   : > { %7095 = vmatmul.mubr.msk.f32.gmra.mrb[14].mxu0 %vm3102_vm7, %v4324_v17 }
 0x42b   : > { %v7087_v21 = vpop.f32.mrb[8].mxu0 }
 0x42c   : > { %v4475_v22 = vadd.f32 %v7087_v21, %v6219_v20  ;;  %v4420_v23 = vpop.f32.mrb[9].mxu0 }
 0x42d   : > { %v4474_v24 = vadd.f32 %v6219_v20, %v4420_v23 }
 0x42e   : > { %4506 = vst.msk [vmem:[#allocation5 + $0x21] sm:$0xff] %vm4482_vm10, %v4475_v22 }
 0x42f   : > { %4505 = vst.msk [vmem:[#allocation5 + $0x11] sm:$0xff] %vm4482_vm10, %v4474_v24  ;;  %v7090_v6 = vpop.f32.mrb[10].mxu0 }
 0x430   : > { %v4477_v25 = vadd.f32 %v7090_v6, %v6219_v20  ;;  %v4430_v26 = vpop.f32.mrb[11].mxu0 }
 0x431   : > { %v4476_v27 = vadd.f32 %v6219_v20, %v4430_v26 }
 0x432   : > { %4508 = vst.msk [vmem:[#allocation5 + $0x41] sm:$0xff] %vm4482_vm10, %v4477_v25 }
 0x433   : > { %4507 = vst.msk [vmem:[#allocation5 + $0x31] sm:$0xff] %vm4482_vm10, %v4476_v27  ;;  %v7093_v28 = vpop.f32.mrb[12].mxu0 }
 0x434   : > { %v4479_v29 = vadd.f32 %v7093_v28, %v6219_v20  ;;  %v4440_v30 = vpop.f32.mrb[13].mxu0 }
 0x435   : > { %v4478_v31 = vadd.f32 %v6219_v20, %v4440_v30  ;;  %v8600_v35 = vld [vmem:[#allocation5 + $0x21] sm:$0xff] }
 0x436   : > { %4510 = vst.msk [vmem:[#allocation5 + $0x61] sm:$0xff] %vm4482_vm10, %v4479_v29  ;;  %v8592_v32 = vld [vmem:[#allocation5 + $0x11] sm:$0xff]  ;;  %v8633_v47 = vld [vmem:[#allocation5 + $0x20] sm:$0xff] }
 0x437   : > { %4509 = vst.msk [vmem:[#allocation5 + $0x51] sm:$0xff] %vm4482_vm10, %v4478_v31  ;;  %v7096_v34 = vpop.f32.mrb[14].mxu0  ;;  %7100 = vmatmul.mubr.msk.f32.vlgmr.msra.gmra.mrb[8].mxu1 %vm4482_vm10, %v8592_v32  ;;  %v4514_v45 = vld [vmem:[#allocation5 + $0x10] sm:$0xff]  ;;  %v8664_v56 = vld [vmem:[#allocation5 + $0x22] sm:$0xff] }
 0x438   : > { %v4481_v36 = vadd.f32 %v7096_v34, %v6219_v20  ;;  %7112 = vmatpush3.msk.msra.mxu1 %vm4556_vm9, %v4521_v19  ;;  %v4450_v37 = vpop.f32.mrb[15].mxu0  ;;  %7102 = vmatprep.mubr.msk.f32.mxu1 %vm4482_vm10, %v8600_v35  ;;  %v4798_v54 = vld [vmem:[#allocation5 + $0x12] sm:$0xff] }
 0x439   : > { %v4480_v38 = vadd.f32 %v6219_v20, %v4450_v37  ;;  %7125 = vmatprep.subr.msk.mxu1 %vm4556_vm9, %v6239_v33  ;;  %v8612_v40 = vld [vmem:[#allocation5 + $0x41] sm:$0xff] }
 0x43a   : > { %4512 = vst.msk [vmem:[#allocation5 + $0x81] sm:$0xff] %vm4482_vm10, %v4481_v36  ;;  %v8607_v39 = vld [vmem:[#allocation5 + $0x31] sm:$0xff]  ;;  %v8643_v49 = vld [vmem:[#allocation5 + $0x40] sm:$0xff] }
 0x43b   : > { %4511 = vst.msk [vmem:[#allocation5 + $0x71] sm:$0xff] %vm4482_vm10, %v4480_v38  ;;  %7103 = vmatmul.mubr.msk.f32.gmra.mrb[10].mxu1 %vm4482_vm10, %v8607_v39  ;;  %v8639_v48 = vld [vmem:[#allocation5 + $0x30] sm:$0xff]  ;;  %v8674_v58 = vld [vmem:[#allocation5 + $0x42] sm:$0xff] }
 0x43c   : > { %7105 = vmatprep.mubr.msk.f32.mxu1 %vm4482_vm10, %v8612_v40  ;;  %v8670_v57 = vld [vmem:[#allocation5 + $0x32] sm:$0xff] }
 0x43d   : > { %v8620_v42 = vld [vmem:[#allocation5 + $0x61] sm:$0xff] }
 0x43e   : > { %v8616_v41 = vld [vmem:[#allocation5 + $0x51] sm:$0xff]  ;;  %v8651_v51 = vld [vmem:[#allocation5 + $0x60] sm:$0xff] }
 0x43f   : > { %7106 = vmatmul.mubr.msk.f32.gmra.mrb[12].mxu1 %vm4482_vm10, %v8616_v41  ;;  %v8647_v50 = vld [vmem:[#allocation5 + $0x50] sm:$0xff]  ;;  %v8682_v60 = vld [vmem:[#allocation5 + $0x62] sm:$0xff] }
 0x440   : > { %7108 = vmatprep.mubr.msk.f32.mxu1 %vm4482_vm10, %v8620_v42  ;;  %v8678_v59 = vld [vmem:[#allocation5 + $0x52] sm:$0xff] }
 0x441   : > { %v4954_v63 = vld [vmem:[#allocation5 + $0x80] sm:$0xff] }
 0x442   : > { %v8624_v44 = vld [vmem:[#allocation5 + $0x71] sm:$0xff]  ;;  %v5104_v1 = vld [vmem:[#allocation5 + $0x81] sm:$0xff] }
 0x443   : > { %7109 = vmatmul.mubr.msk.f32.gmra.mrb[14].mxu1 %vm4482_vm10, %v8624_v44  ;;  %v8655_v53 = vld [vmem:[#allocation5 + $0x70] sm:$0xff]  ;;  %v5254_v3 = vld [vmem:[#allocation5 + $0x82] sm:$0xff] }
 0x444   : > { %7113 = vmatprep.mubr.msk.f32.mxu1 %vm4482_vm10, %v4513_v43  ;;  %v8686_v61 = vld [vmem:[#allocation5 + $0x72] sm:$0xff] }
 0x447   : > { %7114 = vmatmul.mubr.msk.f32.vlgmr.msra.gmra.mrb[8].mxu1 %vm4482_vm10, %v4514_v45 }
 0x448   : > { %7126 = vmatpush3.msk.msra.mxu1 %vm4556_vm9, %v6239_v33  ;;  %7116 = vmatprep.mubr.msk.f32.mxu1 %vm4482_vm10, %v8633_v47 }
 0x449   : > { %7139 = vmatprep.subr.msk.mxu1 %vm4556_vm9, %v6249_v46 }
 0x44b   : > { %7117 = vmatmul.mubr.msk.f32.gmra.mrb[10].mxu1 %vm4482_vm10, %v8639_v48 }
 0x44c   : > { %7119 = vmatprep.mubr.msk.f32.mxu1 %vm4482_vm10, %v8643_v49 }
 0x44f   : > { %7120 = vmatmul.mubr.msk.f32.gmra.mrb[12].mxu1 %vm4482_vm10, %v8647_v50 }
 0x450   : > { %7122 = vmatprep.mubr.msk.f32.mxu1 %vm4482_vm10, %v8651_v51 }
 0x453   : > { %7123 = vmatmul.mubr.msk.f32.gmra.mrb[14].mxu1 %vm4482_vm10, %v8655_v53 }
 0x454   : > { %7127 = vmatprep.mubr.msk.f32.mxu1 %vm4482_vm10, %v4797_v52 }
 0x457   : > { %7128 = vmatmul.mubr.msk.f32.vlgmr.msra.gmra.mrb[8].mxu1 %vm4482_vm10, %v4798_v54 }
 0x458   : > { %7140 = vmatpush3.msk.msra.mxu1 %vm4556_vm9, %v6249_v46  ;;  %7130 = vmatprep.mubr.msk.f32.mxu1 %vm4482_vm10, %v8664_v56 }
 0x459   : > { %7153 = vmatprep.subr.msk.mxu1 %vm4556_vm9, %v6259_v55 }
 0x45b   : > { %7131 = vmatmul.mubr.msk.f32.gmra.mrb[10].mxu1 %vm4482_vm10, %v8670_v57 }
 0x45c   : > { %7133 = vmatprep.mubr.msk.f32.mxu1 %vm4482_vm10, %v8674_v58 }
 0x45f   : > { %7134 = vmatmul.mubr.msk.f32.gmra.mrb[12].mxu1 %vm4482_vm10, %v8678_v59 }
 0x460   : > { %7136 = vmatprep.mubr.msk.f32.mxu1 %vm4482_vm10, %v8682_v60 }
 0x463   : > { %7137 = vmatmul.mubr.msk.f32.gmra.mrb[14].mxu1 %vm4482_vm10, %v8686_v61 }
 0x464   : > { %7141 = vmatprep.mubr.msk.f32.mxu1 %vm4482_vm10, %v4514_v45 }
 0x467   : > { %7142 = vmatmul.mubr.msk.f32.vlgmr.msra.gmra.mrb[8].mxu1 %vm4482_vm10, %v8633_v47 }
 0x468   : > { %7154 = vmatpush3.msk.msra.mxu1 %vm4556_vm9, %v6259_v55  ;;  %7144 = vmatprep.mubr.msk.f32.mxu1 %vm4482_vm10, %v8639_v48 }
 0x469   : > { %7167 = vmatprep.subr.msk.mxu1 %vm4556_vm9, %v6269_v62 }
 0x46b   : > { %7145 = vmatmul.mubr.msk.f32.gmra.mrb[10].mxu1 %vm4482_vm10, %v8643_v49 }
 0x46c   : > { %7147 = vmatprep.mubr.msk.f32.mxu1 %vm4482_vm10, %v8647_v50 }
 0x46f   : > { %7148 = vmatmul.mubr.msk.f32.gmra.mrb[12].mxu1 %vm4482_vm10, %v8651_v51 }
 0x470   : > { %7150 = vmatprep.mubr.msk.f32.mxu1 %vm4482_vm10, %v8655_v53 }
 0x473   : > { %7151 = vmatmul.mubr.msk.f32.gmra.mrb[14].mxu1 %vm4482_vm10, %v4954_v63 }
 0x474   : > { %7155 = vmatprep.mubr.msk.f32.mxu1 %vm4482_vm10, %v8592_v32 }
 0x477   : > { %7156 = vmatmul.mubr.msk.f32.vlgmr.msra.gmra.mrb[8].mxu1 %vm4482_vm10, %v8600_v35 }
 0x478   : > { %7168 = vmatpush3.msk.msra.mxu1 %vm4556_vm9, %v6269_v62  ;;  %7158 = vmatprep.mubr.msk.f32.mxu1 %vm4482_vm10, %v8607_v39 }
 0x479   : > { %7181 = vmatprep.subr.msk.mxu1 %vm4556_vm9, %v6279_v0 }
 0x47b   : > { %7159 = vmatmul.mubr.msk.f32.gmra.mrb[10].mxu1 %vm4482_vm10, %v8612_v40 }
 0x47c   : > { %7161 = vmatprep.mubr.msk.f32.mxu1 %vm4482_vm10, %v8616_v41 }
 0x47f   : > { %7162 = vmatmul.mubr.msk.f32.gmra.mrb[12].mxu1 %vm4482_vm10, %v8620_v42 }
 0x480   : > { %7164 = vmatprep.mubr.msk.f32.mxu1 %vm4482_vm10, %v8624_v44 }
 0x483   : > { %7165 = vmatmul.mubr.msk.f32.gmra.mrb[14].mxu1 %vm4482_vm10, %v5104_v1 }
 0x484   : > { %7169 = vmatprep.mubr.msk.f32.mxu1 %vm4482_vm10, %v4798_v54 }
 0x487   : > { %7170 = vmatmul.mubr.msk.f32.vlgmr.msra.gmra.mrb[8].mxu1 %vm4482_vm10, %v8664_v56 }
 0x488   : > { %7182 = vmatpush3.msk.msra.mxu1 %vm4556_vm9, %v6279_v0  ;;  %7172 = vmatprep.mubr.msk.f32.mxu1 %vm4482_vm10, %v8670_v57 }
 0x489   : > { %7195 = vmatprep.subr.msk.mxu1 %vm4556_vm9, %v6289_v2 }
 0x48b   : > { %7173 = vmatmul.mubr.msk.f32.gmra.mrb[10].mxu1 %vm4482_vm10, %v8674_v58 }
 0x48c   : > { %7175 = vmatprep.mubr.msk.f32.mxu1 %vm4482_vm10, %v8678_v59 }
 0x48f   : > { %7176 = vmatmul.mubr.msk.f32.gmra.mrb[12].mxu1 %vm4482_vm10, %v8682_v60 }
 0x490   : > { %7178 = vmatprep.mubr.msk.f32.mxu1 %vm4482_vm10, %v8686_v61 }
 0x493   : > { %7179 = vmatmul.mubr.msk.f32.gmra.mrb[14].mxu1 %vm4482_vm10, %v5254_v3 }
 0x494   : > { %7183 = vmatprep.mubr.msk.f32.mxu1 %vm4482_vm10, %v8633_v47 }
 0x497   : > { %7184 = vmatmul.mubr.msk.f32.vlgmr.msra.gmra.mrb[8].mxu1 %vm4482_vm10, %v8639_v48 }
 0x498   : > { %7196 = vmatpush3.msk.msra.mxu1 %vm4556_vm9, %v6289_v2  ;;  %7186 = vmatprep.mubr.msk.f32.mxu1 %vm4482_vm10, %v8643_v49 }
 0x499   : > { %7209 = vmatprep.subr.msk.mxu1 %vm4556_vm9, %v6299_v4 }
 0x49b   : > { %7187 = vmatmul.mubr.msk.f32.gmra.mrb[10].mxu1 %vm4482_vm10, %v8647_v50 }
 0x49c   : > { %7189 = vmatprep.mubr.msk.f32.mxu1 %vm4482_vm10, %v8651_v51 }
 0x49f   : > { %7190 = vmatmul.mubr.msk.f32.gmra.mrb[12].mxu1 %vm4482_vm10, %v8655_v53 }
 0x4a0   : > { %7192 = vmatprep.mubr.msk.f32.mxu1 %vm4482_vm10, %v4954_v63 }
 0x4a3   : > { %7193 = vmatmul.mubr.msk.f32.gmra.mrb[14].mxu1 %vm4482_vm10, %v5405_v5 }
 0x4a4   : > { %7197 = vmatprep.mubr.msk.f32.mxu1 %vm4482_vm10, %v8600_v35 }
 0x4a7   : > { %7198 = vmatmul.mubr.msk.f32.vlgmr.msra.gmra.mrb[8].mxu1 %vm4482_vm10, %v8607_v39 }
 0x4a8   : > { %7210 = vmatpush3.msk.msra.mxu1 %vm4556_vm9, %v6299_v4  ;;  %7200 = vmatprep.mubr.msk.f32.mxu1 %vm4482_vm10, %v8612_v40 }
 0x4ab   : > { %7201 = vmatmul.mubr.msk.f32.gmra.mrb[10].mxu1 %vm4482_vm10, %v8616_v41 }
 0x4ac   : > { %7203 = vmatprep.mubr.msk.f32.mxu1 %vm4482_vm10, %v8620_v42 }
 0x4af   : > { %7204 = vmatmul.mubr.msk.f32.gmra.mrb[12].mxu1 %vm4482_vm10, %v8624_v44 }
 0x4b0   : > { %7206 = vmatprep.mubr.msk.f32.mxu1 %vm4482_vm10, %v5104_v1 }
 0x4b3   : > { %7207 = vmatmul.mubr.msk.f32.gmra.mrb[14].mxu1 %vm4482_vm10, %v5555_v7 }
 0x4b4   : > { %7211 = vmatprep.mubr.msk.f32.mxu1 %vm4482_vm10, %v8664_v56 }
 0x4b7   : > { %7212 = vmatmul.mubr.msk.f32.vlgmr.msra.gmra.mrb[8].mxu1 %vm4482_vm10, %v8670_v57 }
 0x4b8   : > { %7214 = vmatprep.mubr.msk.f32.mxu1 %vm4482_vm10, %v8674_v58 }
 0x4bb   : > { %7215 = vmatmul.mubr.msk.f32.gmra.mrb[10].mxu1 %vm4482_vm10, %v8678_v59 }
 0x4bc   : > { %7217 = vmatprep.mubr.msk.f32.mxu1 %vm4482_vm10, %v8682_v60 }
 0x4bf   : > { %7218 = vmatmul.mubr.msk.f32.gmra.mrb[12].mxu1 %vm4482_vm10, %v8686_v61 }
 0x4c0   : > { %7220 = vmatprep.mubr.msk.f32.mxu1 %vm4482_vm10, %v5254_v3 }
 0x4c3   : > { %7221 = vmatmul.mubr.msk.f32.gmra.mrb[14].mxu1 %vm4482_vm10, %v5705_v8 }
 0x58a   : > { %v7213_v10 = vpop.f32.mrb[8].mxu1 }
 0x58b   : > { %v5856_v11 = vadd.f32 %v7213_v10, %v6309_v9  ;;  %v5801_v12 = vpop.f32.mrb[9].mxu1 }
 0x58c   : > { %v5855_v13 = vadd.f32 %v6309_v9, %v5801_v12 }
 0x58d   : > { %5864 = vst.msk [vmem:[%s332_s26 + $0x8] sm:$0xff] %vm341_vm1, %v5856_v11 }
 0x58e   : > { %5863 = vst.msk [vmem:[%s332_s26] sm:$0xff] %vm341_vm1, %v5855_v13  ;;  %v7216_v14 = vpop.f32.mrb[10].mxu1 }
 0x58f   : > { %v5858_v15 = vadd.f32 %v7216_v14, %v6309_v9  ;;  %v5811_v16 = vpop.f32.mrb[11].mxu1 }
 0x590   : > { %v5857_v17 = vadd.f32 %v6309_v9, %v5811_v16 }
 0x591   : > { %5866 = vst.msk [vmem:[%s332_s26 + $0x18] sm:$0xff] %vm341_vm1, %v5858_v15 }
 0x592   : > { %5865 = vst.msk [vmem:[%s332_s26 + $0x10] sm:$0xff] %vm341_vm1, %v5857_v17  ;;  %v7219_v18 = vpop.f32.mrb[12].mxu1 }
 0x593   : > { %v5860_v19 = vadd.f32 %v7219_v18, %v6309_v9  ;;  %v5821_v20 = vpop.f32.mrb[13].mxu1 }
 0x594   : > { %v5859_v21 = vadd.f32 %v6309_v9, %v5821_v20 }
 0x595   : > { %5868 = vst.msk [vmem:[%s332_s26 + $0x28] sm:$0xff] %vm341_vm1, %v5860_v19 }
 0x596   : > { %5867 = vst.msk [vmem:[%s332_s26 + $0x20] sm:$0xff] %vm341_vm1, %v5859_v21  ;;  %v7222_v22 = vpop.f32.mrb[14].mxu1 }
 0x597   : > { %v5862_v23 = vadd.f32 %v7222_v22, %v6309_v9  ;;  %v5831_v24 = vpop.f32.mrb[15].mxu1 }
 0x598   : > { %v5861_v6 = vadd.f32 %v6309_v9, %v5831_v24 }
 0x599   : > { %5870 = vst.msk [vmem:[%s332_s26 + $0x38] sm:$0xff] %vm341_vm1, %v5862_v23 }
 0x59a   : > { %5869 = vst.msk [vmem:[%s332_s26 + $0x30] sm:$0xff] %vm341_vm1, %v5861_v6 }
 0x59b PF: > { %s19_s30 = sadd.s32 1, %s7585_s30  }
 0x59c   : > { %p16_p4 = scmp.ge.s32.totalorder %s19_s30, 4  }
 0x59e   :  { %18 = sbr.rel (!%p16_p4) target bundleno = 1 (0x1), region = 126 }

</bundles_post_ra>
